<compile_context>
chip_gen: v5e
topology: v5e:2x2
jax: 0.10.0
libtpu: 0.0.40
codegen_flags: <defaults>
</compile_context>

<pallas_src>
import numpy as np
import jax
import jax.numpy as jnp
from jax.experimental import pallas as pl
from jax.experimental.pallas import tpu as pltpu

# ---- model hyper-parameters (small demo sizes, consistent with the module) ----
BATCH = 8
INPUT_DIM = 16          # D
OUTPUT_DIM = 4
N_D = 8
N_A = 8
N_SHARED = 2
N_IND = 2
N_STEPS = 3
RELAX = 1.2             # unused downstream: priors never propagate back to the caller
H = N_D + N_A
TWO_H = 2 * H
N_FT = N_STEPS          # first_step + (N_STEPS - 1) decision-step feature transformers
N_AT = N_STEPS - 1
N_GLU_REST = (N_SHARED - 1) + N_IND   # GLUs after the first one, per feature transformer
EPS_BN = 1e-5
SCALE = float(np.sqrt(np.float32(0.5)))   # torch.sqrt(torch.tensor([0.5]))

assert INPUT_DIM == H, "single 16-row weight slab relies on INPUT_DIM == n_d + n_a"

# ---- packed-slab lane layout --------------------------------------------------
LANE = 128
# weight slab W: (H, W_LANES) f32
#   [ft*128      , ft*128 +  32) : GLU0 weight of feature transformer ft
#   [ft*128 + 32 , ft*128 + 128) : rest-GLU weights (N_GLU_REST x 2H lanes)
#   [AT_W_OFF+s*D, +D)           : attention weight of step s (d-rows zeroed)
#   [FC_OFF      , FC_OFF + 128) : final fc weight (a-rows zeroed, lane-padded)
AT_W_OFF = N_FT * LANE                # 384
FC_OFF = AT_W_OFF + LANE              # 512
W_LANES = FC_OFF + LANE               # 640
# vector slab V: (1, W_LANES) f32
#   [ft*128, ft*128+128)          : GLU0 + rest-GLU biases (GBN folded)
#   [BN_S_OFF, +D) / [BN_T_OFF, +D): input-BN scale / shift
#   [AT_B_OFF+s*D, +D)            : attention bias of step s
#   [FC_OFF, FC_OFF+128)          : final fc bias (lane-padded with zeros)
BN_S_OFF = AT_W_OFF                   # 384
BN_T_OFF = BN_S_OFF + INPUT_DIM       # 400
AT_B_OFF = BN_T_OFF + INPUT_DIM       # 416


# ----------------------------------------------------------------------------
# Pallas kernel
# ----------------------------------------------------------------------------
def _sparsemax(z, d):
  """Sparsemax along the lane axis; sort-free O(d^2) formulation.

  No max-shift (sparsemax is exactly shift invariant), and rank/csum use 4
  independent partial accumulators so the d unrolled iterations pipeline
  instead of forming one serial fp-add chain.  The only cross-lane reduces
  are the final support-size / support-sum pair.
  """
  f32 = jnp.float32
  n_acc = 4
  rank = [jnp.zeros_like(z) for _ in range(n_acc)]
  csum = [jnp.zeros_like(z) for _ in range(n_acc)]
  for j in range(d):                                  # static unroll, d is small
    zj = z[:, j:j + 1]                                # (B, 1): column j
    ge = (zj >= z).astype(f32)                        # ge[:, i] = [z_j >= z_i]
    a = j % n_acc
    rank[a] = rank[a] + ge                            # rank_i = #{j : z_j >= z_i}
    csum[a] = csum[a] + ge * zj                       # csum_i = sum_{j: z_j>=z_i} z_j
  rank_t = (rank[0] + rank[1]) + (rank[2] + rank[3])
  csum_t = (csum[0] + csum[1]) + (csum[2] + csum[3])
  cond = (1.0 + rank_t * z > csum_t).astype(f32)      # support indicator
  k = jnp.sum(cond, axis=1, keepdims=True)            # support size (>= 1 always)
  s_sup = jnp.sum(cond * z, axis=1, keepdims=True)    # sum over support
  tau = (s_sup - 1.0) / k
  return jnp.maximum(z - tau, 0.0)


def tabnet_kernel(x_ref, w_ref, v_ref, logits_ref, loss_ref):
  f32 = jnp.float32

  # input BatchNorm1d (eval mode, folded into scale/shift)
  x = (x_ref[...] * v_ref[:, BN_S_OFF:BN_S_OFF + INPUT_DIM]
       + v_ref[:, BN_T_OFF:BN_T_OFF + INPUT_DIM])

  def glu(xin, lane_off):
    # Fused GLU: one (in, 2H) matmul + bias (GBN folded), static lane split,
    # sigmoid written as exp + approx-reciprocal (both on the EUP slot).
    w = w_ref[:, lane_off:lane_off + TWO_H]
    b = v_ref[:, lane_off:lane_off + TWO_H]
    y = jnp.dot(xin, w, preferred_element_type=f32) + b        # (B, 2H)
    gate = pl.reciprocal(1.0 + jnp.exp(-y[:, H:]), approx=True)
    return y[:, :H] * gate

  def feature_transformer(ft, xin):
    base = ft * LANE
    h = glu(xin, base)                                # shared GLU0, no residual
    for g in range(N_GLU_REST):                       # residual GLUs * sqrt(0.5)
      h = (h + glu(h, base + (g + 1) * TWO_H)) * SCALE
    return h

  h = feature_transformer(0, x)           # (B, H); x_a lives in columns [N_D:]
  out_acc = jnp.zeros((BATCH, H), f32)    # only the first N_D cols matter downstream
  loss = 0.0

  for s in range(N_STEPS - 1):
    # AttentionTransformer: fc + GBN folded; d-rows zero-padded so the full h
    # can be used without slicing ((full h) @ aw == x_a @ W_orig).
    aw = w_ref[:, AT_W_OFF + s * INPUT_DIM:AT_W_OFF + (s + 1) * INPUT_DIM]
    ab = v_ref[:, AT_B_OFF + s * INPUT_DIM:AT_B_OFF + (s + 1) * INPUT_DIM]
    a = jnp.dot(h, aw, preferred_element_type=f32) + ab
    # priors are all-ones in the reference code, so the `* priors` is dropped.
    mask = _sparsemax(a, INPUT_DIM)
    ent = -mask * jnp.log(mask + 1e-10)
    loss = loss + jnp.sum(ent) * (1.0 / (BATCH * INPUT_DIM))   # .mean()
    h = feature_transformer(s + 1, x * mask)
    out_acc = out_acc + jnp.maximum(h, 0.0)                    # F.relu

  # final fc: weight zero-padded on the a-rows and out to 128 lanes ->
  # lane-dense unmasked (B, 128) store; host slices the first OUTPUT_DIM lanes.
  logits_ref[...] = (jnp.dot(out_acc, w_ref[:, FC_OFF:FC_OFF + LANE],
                             preferred_element_type=f32)
                     + v_ref[:, FC_OFF:FC_OFF + LANE])
  loss_ref[0, 0] = loss


# ----------------------------------------------------------------------------
# Host-side wrapper
# ----------------------------------------------------------------------------
def tabnet_forward(x, w_slab, v_slab):
  vmem = pl.BlockSpec(memory_space=pltpu.MemorySpace.VMEM)
  smem = pl.BlockSpec(memory_space=pltpu.MemorySpace.SMEM)
  logits_full, loss = pl.pallas_call(
      tabnet_kernel,
      out_shape=(jax.ShapeDtypeStruct((BATCH, LANE), jnp.float32),
                 jax.ShapeDtypeStruct((1, 1), jnp.float32)),
      in_specs=[vmem, vmem, vmem],
      out_specs=(vmem, smem),
  )(x, w_slab, v_slab)
  return logits_full[:, :OUTPUT_DIM], loss.reshape(1)


# ----------------------------------------------------------------------------
# Deterministic parameter construction (BN folded, GLU weights fused) + packing
# ----------------------------------------------------------------------------
def _fold_bn(gamma, beta, mean, var):
  s = gamma / jnp.sqrt(var + EPS_BN)
  t = beta - mean * s
  return s, t


def init_params(key):
  keys = iter(jax.random.split(key, 256))

  def nrm(shape, scale=1.0):
    return scale * jax.random.normal(next(keys), shape, dtype=jnp.float32)

  def bn(n):
    gamma = 1.0 + 0.1 * nrm((n,))
    beta = 0.1 * nrm((n,))
    mean = 0.1 * nrm((n,))
    var = jax.random.uniform(next(keys), (n,), jnp.float32, 0.5, 1.5)
    return _fold_bn(gamma, beta, mean, var)

  # input BatchNorm1d(input_dim)
  bn_s, bn_t = bn(INPUT_DIM)

  # shared Linear layers (weights stored (in, out))
  shared_w = [nrm((INPUT_DIM, TWO_H), 1.0 / np.sqrt(INPUT_DIM)),
              nrm((H, TWO_H), 1.0 / np.sqrt(H))]
  shared_b = [0.05 * nrm((TWO_H,)), 0.05 * nrm((TWO_H,))]

  w0, b0, wg, bg = [], [], [], []
  for _ft in range(N_FT):
    # GLU0: shared[0] linear + this FT's own GBN, folded (kept fused (in, 2H))
    s, t = bn(TWO_H)
    w0.append(shared_w[0] * s[None, :])                    # (INPUT_DIM, 2H)
    b0.append((shared_b[0] * s + t)[None, :])              # (1, 2H)
    ws, bs = [], []
    for g in range(N_GLU_REST):
      if g < N_SHARED - 1:                                 # remaining shared GLU(s)
        Wg, bgv = shared_w[1 + g], shared_b[1 + g]
      else:                                                # independent GLUs
        Wg = nrm((H, TWO_H), 1.0 / np.sqrt(H))
        bgv = 0.05 * nrm((TWO_H,))
      s, t = bn(TWO_H)
      ws.append(Wg * s[None, :])
      bs.append((bgv * s + t)[None, :])
    wg.append(jnp.concatenate(ws, axis=1))                 # (H, N_GLU_REST*2H)
    bg.append(jnp.concatenate(bs, axis=1))                 # (1, N_GLU_REST*2H)

  # AttentionTransformers: Linear(n_a, input_dim) + GBN, folded, zero-padded rows
  atw, atb = [], []
  for _s in range(N_AT):
    W = nrm((N_A, INPUT_DIM), 1.0 / np.sqrt(N_A))
    bvec = 0.05 * nrm((INPUT_DIM,))
    s, t = bn(INPUT_DIM)
    W = W * s[None, :]
    bvec = bvec * s + t
    Wpad = jnp.concatenate(
        [jnp.zeros((N_D, INPUT_DIM), jnp.float32), W], axis=0)     # (H, D)
    atw.append(Wpad)
    atb.append(bvec[None, :])

  # final fc: Linear(n_d, output_dim), zero-padded rows for the a-part
  fc_w = nrm((N_D, OUTPUT_DIM), 1.0 / np.sqrt(N_D))
  fc_b = 0.05 * nrm((OUTPUT_DIM,))
  fc_w_pad = jnp.concatenate(
      [fc_w, jnp.zeros((N_A, OUTPUT_DIM), jnp.float32)], axis=0)   # (H, out)

  return dict(
      bn_s=bn_s[None, :], bn_t=bn_t[None, :],
      w0=jnp.stack(w0), b0=jnp.stack(b0),
      wg=jnp.stack(wg), bg=jnp.stack(bg),
      atw=jnp.stack(atw), atb=jnp.stack(atb),
      fcw=fc_w_pad, fcb=fc_b[None, :],
  )


def pack_params(p):
  """Pack all parameters into one (H, 640) weight slab and one (1, 640) vector slab."""
  f32 = jnp.float32
  ft_w = [jnp.concatenate([p["w0"][i], p["wg"][i]], axis=1) for i in range(N_FT)]
  at_w = jnp.concatenate([p["atw"][s] for s in range(N_AT)], axis=1)        # (H, 32)
  at_pad = jnp.zeros((H, LANE - N_AT * INPUT_DIM), f32)                     # (H, 96)
  fc_w = jnp.concatenate([p["fcw"],
                          jnp.zeros((H, LANE - OUTPUT_DIM), f32)], axis=1)  # (H, 128)
  w_slab = jnp.concatenate(ft_w + [at_w, at_pad, fc_w], axis=1)             # (H, 640)

  ft_b = [jnp.concatenate([p["b0"][i], p["bg"][i]], axis=1) for i in range(N_FT)]
  misc = jnp.concatenate([p["bn_s"], p["bn_t"], p["atb"][0], p["atb"][1]], axis=1)
  misc_pad = jnp.zeros((1, LANE - misc.shape[1]), f32)
  fc_b = jnp.concatenate([p["fcb"],
                          jnp.zeros((1, LANE - OUTPUT_DIM), f32)], axis=1)
  v_slab = jnp.concatenate(ft_b + [misc, misc_pad, fc_b], axis=1)           # (1, 640)
  return w_slab, v_slab


# ----------------------------------------------------------------------------
# Pure-JAX reference (mirrors the PyTorch module structure) for validation
# ----------------------------------------------------------------------------
def _sparsemax_ref(z):
  z = z - jnp.max(z, axis=1, keepdims=True)
  zs = -jnp.sort(-z, axis=1)
  rng = jnp.arange(1, z.shape[1] + 1, dtype=jnp.float32)[None, :]
  cssv = jnp.cumsum(zs, axis=1)
  is_gt = (1.0 + rng * zs > cssv).astype(jnp.float32)
  k = jnp.max(is_gt * rng, axis=1, keepdims=True)
  tau = (jnp.sum(is_gt * zs, axis=1, keepdims=True) - 1.0) / k
  return jnp.maximum(z - tau, 0.0)


def reference_forward(x, p):
  xb = x * p["bn_s"] + p["bn_t"]

  def glu(xin, w, b):
    y = xin @ w + b
    return y[:, :H] * jax.nn.sigmoid(y[:, H:])

  def ft(i, xin):
    h = glu(xin, p["w0"][i], p["b0"][i])
    for g in range(N_GLU_REST):
      lo = g * TWO_H
      h = (h + glu(h, p["wg"][i][:, lo:lo + TWO_H],
                   p["bg"][i][:, lo:lo + TWO_H])) * SCALE
    return h

  h = ft(0, xb)
  x_a = h[:, N_D:]
  out = jnp.zeros((BATCH, N_D), jnp.float32)
  priors = jnp.ones_like(xb)       # never updated (matches reference PyTorch code)
  loss = jnp.zeros((1,), jnp.float32)
  for s in range(N_STEPS - 1):
    a = x_a @ p["atw"][s, N_D:, :] + p["atb"][s]
    mask = _sparsemax_ref(a * priors)
    loss = loss + jnp.mean(-mask * jnp.log(mask + 1e-10))
    h = ft(s + 1, xb * mask)
    out = out + jax.nn.relu(h[:, :N_D])
    x_a = h[:, N_D:]
  logits = out @ p["fcw"][:N_D, :] + p["fcb"]
  return logits, loss


# ----------------------------------------------------------------------------
if __name__ == "__main__":
  key = jax.random.PRNGKey(0)
  kx, kp = jax.random.split(key)
  x = jax.random.normal(kx, (BATCH, INPUT_DIM), dtype=jnp.float32)
  params = init_params(kp)
  w_slab, v_slab = pack_params(params)

  logits, loss = tabnet_forward(x, w_slab, v_slab)
  jax.block_until_ready((logits, loss))

  ref_logits, ref_loss = reference_forward(x, params)
  np.testing.assert_allclose(np.asarray(logits), np.asarray(ref_logits),
                             rtol=2e-2, atol=2e-2)
  np.testing.assert_allclose(np.asarray(loss), np.asarray(ref_loss),
                             rtol=2e-2, atol=2e-2)
  print("KERNEL_OK")
</pallas_src>

<mosaic_0001>
module attributes {stable_mosaic.version = 11 : i64} {
  func.func @tabnet_kernel(%arg0: memref<8x16xf32, #tpu.memory_space<vmem>>, %arg1: memref<16x640xf32, #tpu.memory_space<vmem>>, %arg2: memref<1x640xf32, #tpu.memory_space<vmem>>, %arg3: memref<8x128xf32, #tpu.memory_space<vmem>>, %arg4: memref<1x1xf32, #tpu.memory_space<smem>>) attributes {dimension_semantics = [], scalar_prefetch = 0 : i64, scratch_operands = 0 : i64, tpu.core_type = #tpu.core_type<tc>} {
    %c0 = arith.constant 0 : index
    %c0_0 = arith.constant 0 : index
    %0 = vector.load %arg0[%c0, %c0_0] : memref<8x16xf32, #tpu.memory_space<vmem>>, vector<8x16xf32>
    %c0_1 = arith.constant 0 : index
    %c384 = arith.constant 384 : index
    %1 = vector.load %arg2[%c0_1, %c384] : memref<1x640xf32, #tpu.memory_space<vmem>>, vector<1x16xf32>
    %2 = vector.broadcast %1 : vector<1x16xf32> to vector<8x16xf32>
    %3 = arith.mulf %0, %2 : vector<8x16xf32>
    %c0_2 = arith.constant 0 : index
    %c400 = arith.constant 400 : index
    %4 = vector.load %arg2[%c0_2, %c400] : memref<1x640xf32, #tpu.memory_space<vmem>>, vector<1x16xf32>
    %5 = vector.broadcast %4 : vector<1x16xf32> to vector<8x16xf32>
    %6 = arith.addf %3, %5 : vector<8x16xf32>
    %c0_3 = arith.constant 0 : index
    %c0_4 = arith.constant 0 : index
    %7 = vector.load %arg1[%c0_3, %c0_4] : memref<16x640xf32, #tpu.memory_space<vmem>>, vector<16x32xf32>
    %c0_5 = arith.constant 0 : index
    %c0_6 = arith.constant 0 : index
    %8 = vector.load %arg2[%c0_5, %c0_6] : memref<1x640xf32, #tpu.memory_space<vmem>>, vector<1x32xf32>
    %cst = arith.constant dense<0.000000e+00> : vector<8x32xf32>
    %9 = tpu.matmul %6, %7, %cst {dimension_numbers = #tpu.dot_dimension_numbers<[1], [0], [0], [1], [0, 0, 1, 1], [], []>} : vector<8x16xf32>, vector<16x32xf32>, vector<8x32xf32> -> vector<8x32xf32>
    %10 = vector.broadcast %8 : vector<1x32xf32> to vector<8x32xf32>
    %11 = arith.addf %9, %10 : vector<8x32xf32>
    %12 = vector.extract_strided_slice %11 {offsets = [0, 16], sizes = [8, 16], strides = [1, 1]} : vector<8x32xf32> to vector<8x16xf32>
    %cst_7 = arith.constant 0.000000e+00 : f32
    %13 = vector.broadcast %cst_7 : f32 to vector<8x16xf32>
    %14 = arith.subf %13, %12 : vector<8x16xf32>
    %15 = math.exp %14 : vector<8x16xf32>
    %cst_8 = arith.constant 1.000000e+00 : f32
    %16 = vector.broadcast %cst_8 : f32 to vector<8x16xf32>
    %17 = arith.addf %16, %15 : vector<8x16xf32>
    %18 = tpu.reciprocal %17 {approx = true} : vector<8x16xf32> -> vector<8x16xf32>
    %19 = vector.extract_strided_slice %11 {offsets = [0, 0], sizes = [8, 16], strides = [1, 1]} : vector<8x32xf32> to vector<8x16xf32>
    %20 = arith.mulf %19, %18 : vector<8x16xf32>
    %c0_9 = arith.constant 0 : index
    %c32 = arith.constant 32 : index
    %21 = vector.load %arg1[%c0_9, %c32] : memref<16x640xf32, #tpu.memory_space<vmem>>, vector<16x32xf32>
    %c0_10 = arith.constant 0 : index
    %c32_11 = arith.constant 32 : index
    %22 = vector.load %arg2[%c0_10, %c32_11] : memref<1x640xf32, #tpu.memory_space<vmem>>, vector<1x32xf32>
    %cst_12 = arith.constant dense<0.000000e+00> : vector<8x32xf32>
    %23 = tpu.matmul %20, %21, %cst_12 {dimension_numbers = #tpu.dot_dimension_numbers<[1], [0], [0], [1], [0, 0, 1, 1], [], []>} : vector<8x16xf32>, vector<16x32xf32>, vector<8x32xf32> -> vector<8x32xf32>
    %24 = vector.broadcast %22 : vector<1x32xf32> to vector<8x32xf32>
    %25 = arith.addf %23, %24 : vector<8x32xf32>
    %26 = vector.extract_strided_slice %25 {offsets = [0, 16], sizes = [8, 16], strides = [1, 1]} : vector<8x32xf32> to vector<8x16xf32>
    %cst_13 = arith.constant 0.000000e+00 : f32
    %27 = vector.broadcast %cst_13 : f32 to vector<8x16xf32>
    %28 = arith.subf %27, %26 : vector<8x16xf32>
    %29 = math.exp %28 : vector<8x16xf32>
    %cst_14 = arith.constant 1.000000e+00 : f32
    %30 = vector.broadcast %cst_14 : f32 to vector<8x16xf32>
    %31 = arith.addf %30, %29 : vector<8x16xf32>
    %32 = tpu.reciprocal %31 {approx = true} : vector<8x16xf32> -> vector<8x16xf32>
    %33 = vector.extract_strided_slice %25 {offsets = [0, 0], sizes = [8, 16], strides = [1, 1]} : vector<8x32xf32> to vector<8x16xf32>
    %34 = arith.mulf %33, %32 : vector<8x16xf32>
    %35 = arith.addf %20, %34 : vector<8x16xf32>
    %cst_15 = arith.constant 0.707106769 : f32
    %36 = vector.broadcast %cst_15 : f32 to vector<8x16xf32>
    %37 = arith.mulf %35, %36 : vector<8x16xf32>
    %c0_16 = arith.constant 0 : index
    %c64 = arith.constant 64 : index
    %38 = vector.load %arg1[%c0_16, %c64] : memref<16x640xf32, #tpu.memory_space<vmem>>, vector<16x32xf32>
    %c0_17 = arith.constant 0 : index
    %c64_18 = arith.constant 64 : index
    %39 = vector.load %arg2[%c0_17, %c64_18] : memref<1x640xf32, #tpu.memory_space<vmem>>, vector<1x32xf32>
    %cst_19 = arith.constant dense<0.000000e+00> : vector<8x32xf32>
    %40 = tpu.matmul %37, %38, %cst_19 {dimension_numbers = #tpu.dot_dimension_numbers<[1], [0], [0], [1], [0, 0, 1, 1], [], []>} : vector<8x16xf32>, vector<16x32xf32>, vector<8x32xf32> -> vector<8x32xf32>
    %41 = vector.broadcast %39 : vector<1x32xf32> to vector<8x32xf32>
    %42 = arith.addf %40, %41 : vector<8x32xf32>
    %43 = vector.extract_strided_slice %42 {offsets = [0, 16], sizes = [8, 16], strides = [1, 1]} : vector<8x32xf32> to vector<8x16xf32>
    %cst_20 = arith.constant 0.000000e+00 : f32
    %44 = vector.broadcast %cst_20 : f32 to vector<8x16xf32>
    %45 = arith.subf %44, %43 : vector<8x16xf32>
    %46 = math.exp %45 : vector<8x16xf32>
    %cst_21 = arith.constant 1.000000e+00 : f32
    %47 = vector.broadcast %cst_21 : f32 to vector<8x16xf32>
    %48 = arith.addf %47, %46 : vector<8x16xf32>
    %49 = tpu.reciprocal %48 {approx = true} : vector<8x16xf32> -> vector<8x16xf32>
    %50 = vector.extract_strided_slice %42 {offsets = [0, 0], sizes = [8, 16], strides = [1, 1]} : vector<8x32xf32> to vector<8x16xf32>
    %51 = arith.mulf %50, %49 : vector<8x16xf32>
    %52 = arith.addf %37, %51 : vector<8x16xf32>
    %cst_22 = arith.constant 0.707106769 : f32
    %53 = vector.broadcast %cst_22 : f32 to vector<8x16xf32>
    %54 = arith.mulf %52, %53 : vector<8x16xf32>
    %c0_23 = arith.constant 0 : index
    %c96 = arith.constant 96 : index
    %55 = vector.load %arg1[%c0_23, %c96] : memref<16x640xf32, #tpu.memory_space<vmem>>, vector<16x32xf32>
    %c0_24 = arith.constant 0 : index
    %c96_25 = arith.constant 96 : index
    %56 = vector.load %arg2[%c0_24, %c96_25] : memref<1x640xf32, #tpu.memory_space<vmem>>, vector<1x32xf32>
    %cst_26 = arith.constant dense<0.000000e+00> : vector<8x32xf32>
    %57 = tpu.matmul %54, %55, %cst_26 {dimension_numbers = #tpu.dot_dimension_numbers<[1], [0], [0], [1], [0, 0, 1, 1], [], []>} : vector<8x16xf32>, vector<16x32xf32>, vector<8x32xf32> -> vector<8x32xf32>
    %58 = vector.broadcast %56 : vector<1x32xf32> to vector<8x32xf32>
    %59 = arith.addf %57, %58 : vector<8x32xf32>
    %60 = vector.extract_strided_slice %59 {offsets = [0, 16], sizes = [8, 16], strides = [1, 1]} : vector<8x32xf32> to vector<8x16xf32>
    %cst_27 = arith.constant 0.000000e+00 : f32
    %61 = vector.broadcast %cst_27 : f32 to vector<8x16xf32>
    %62 = arith.subf %61, %60 : vector<8x16xf32>
    %63 = math.exp %62 : vector<8x16xf32>
    %cst_28 = arith.constant 1.000000e+00 : f32
    %64 = vector.broadcast %cst_28 : f32 to vector<8x16xf32>
    %65 = arith.addf %64, %63 : vector<8x16xf32>
    %66 = tpu.reciprocal %65 {approx = true} : vector<8x16xf32> -> vector<8x16xf32>
    %67 = vector.extract_strided_slice %59 {offsets = [0, 0], sizes = [8, 16], strides = [1, 1]} : vector<8x32xf32> to vector<8x16xf32>
    %68 = arith.mulf %67, %66 : vector<8x16xf32>
    %69 = arith.addf %54, %68 : vector<8x16xf32>
    %cst_29 = arith.constant 0.707106769 : f32
    %70 = vector.broadcast %cst_29 : f32 to vector<8x16xf32>
    %71 = arith.mulf %69, %70 : vector<8x16xf32>
    %cst_30 = arith.constant 0.000000e+00 : f32
    %72 = vector.broadcast %cst_30 : f32 to vector<8x16xf32>
    %c0_31 = arith.constant 0 : index
    %c384_32 = arith.constant 384 : index
    %73 = vector.load %arg1[%c0_31, %c384_32] : memref<16x640xf32, #tpu.memory_space<vmem>>, vector<16x16xf32>
    %c0_33 = arith.constant 0 : index
    %c416 = arith.constant 416 : index
    %74 = vector.load %arg2[%c0_33, %c416] : memref<1x640xf32, #tpu.memory_space<vmem>>, vector<1x16xf32>
    %cst_34 = arith.constant dense<0.000000e+00> : vector<8x16xf32>
    %75 = tpu.matmul %71, %73, %cst_34 {dimension_numbers = #tpu.dot_dimension_numbers<[1], [0], [0], [1], [0, 0, 1, 1], [], []>} : vector<8x16xf32>, vector<16x16xf32>, vector<8x16xf32> -> vector<8x16xf32>
    %76 = vector.broadcast %74 : vector<1x16xf32> to vector<8x16xf32>
    %77 = arith.addf %75, %76 : vector<8x16xf32>
    %cst_35 = arith.constant 0.000000e+00 : f32
    %78 = vector.broadcast %cst_35 : f32 to vector<8x16xf32>
    %cst_36 = arith.constant 0.000000e+00 : f32
    %79 = vector.broadcast %cst_36 : f32 to vector<8x16xf32>
    %cst_37 = arith.constant 0.000000e+00 : f32
    %80 = vector.broadcast %cst_37 : f32 to vector<8x16xf32>
    %cst_38 = arith.constant 0.000000e+00 : f32
    %81 = vector.broadcast %cst_38 : f32 to vector<8x16xf32>
    %cst_39 = arith.constant 0.000000e+00 : f32
    %82 = vector.broadcast %cst_39 : f32 to vector<8x16xf32>
    %cst_40 = arith.constant 0.000000e+00 : f32
    %83 = vector.broadcast %cst_40 : f32 to vector<8x16xf32>
    %cst_41 = arith.constant 0.000000e+00 : f32
    %84 = vector.broadcast %cst_41 : f32 to vector<8x16xf32>
    %cst_42 = arith.constant 0.000000e+00 : f32
    %85 = vector.broadcast %cst_42 : f32 to vector<8x16xf32>
    %86 = vector.extract_strided_slice %77 {offsets = [0, 0], sizes = [8, 1], strides = [1, 1]} : vector<8x16xf32> to vector<8x1xf32>
    %87 = vector.broadcast %86 : vector<8x1xf32> to vector<8x16xf32>
    %88 = arith.cmpf oge, %87, %77 : vector<8x16xf32>
    %89 = arith.extui %88 : vector<8x16xi1> to vector<8x16xi32>
    %90 = arith.sitofp %89 : vector<8x16xi32> to vector<8x16xf32>
    %91 = arith.addf %78, %90 : vector<8x16xf32>
    %92 = vector.broadcast %86 : vector<8x1xf32> to vector<8x16xf32>
    %93 = arith.mulf %90, %92 : vector<8x16xf32>
    %94 = arith.addf %82, %93 : vector<8x16xf32>
    %95 = vector.extract_strided_slice %77 {offsets = [0, 1], sizes = [8, 1], strides = [1, 1]} : vector<8x16xf32> to vector<8x1xf32>
    %96 = vector.broadcast %95 : vector<8x1xf32> to vector<8x16xf32>
    %97 = arith.cmpf oge, %96, %77 : vector<8x16xf32>
    %98 = arith.extui %97 : vector<8x16xi1> to vector<8x16xi32>
    %99 = arith.sitofp %98 : vector<8x16xi32> to vector<8x16xf32>
    %100 = arith.addf %79, %99 : vector<8x16xf32>
    %101 = vector.broadcast %95 : vector<8x1xf32> to vector<8x16xf32>
    %102 = arith.mulf %99, %101 : vector<8x16xf32>
    %103 = arith.addf %83, %102 : vector<8x16xf32>
    %104 = vector.extract_strided_slice %77 {offsets = [0, 2], sizes = [8, 1], strides = [1, 1]} : vector<8x16xf32> to vector<8x1xf32>
    %105 = vector.broadcast %104 : vector<8x1xf32> to vector<8x16xf32>
    %106 = arith.cmpf oge, %105, %77 : vector<8x16xf32>
    %107 = arith.extui %106 : vector<8x16xi1> to vector<8x16xi32>
    %108 = arith.sitofp %107 : vector<8x16xi32> to vector<8x16xf32>
    %109 = arith.addf %80, %108 : vector<8x16xf32>
    %110 = vector.broadcast %104 : vector<8x1xf32> to vector<8x16xf32>
    %111 = arith.mulf %108, %110 : vector<8x16xf32>
    %112 = arith.addf %84, %111 : vector<8x16xf32>
    %113 = vector.extract_strided_slice %77 {offsets = [0, 3], sizes = [8, 1], strides = [1, 1]} : vector<8x16xf32> to vector<8x1xf32>
    %114 = vector.broadcast %113 : vector<8x1xf32> to vector<8x16xf32>
    %115 = arith.cmpf oge, %114, %77 : vector<8x16xf32>
    %116 = arith.extui %115 : vector<8x16xi1> to vector<8x16xi32>
    %117 = arith.sitofp %116 : vector<8x16xi32> to vector<8x16xf32>
    %118 = arith.addf %81, %117 : vector<8x16xf32>
    %119 = vector.broadcast %113 : vector<8x1xf32> to vector<8x16xf32>
    %120 = arith.mulf %117, %119 : vector<8x16xf32>
    %121 = arith.addf %85, %120 : vector<8x16xf32>
    %122 = vector.extract_strided_slice %77 {offsets = [0, 4], sizes = [8, 1], strides = [1, 1]} : vector<8x16xf32> to vector<8x1xf32>
    %123 = vector.broadcast %122 : vector<8x1xf32> to vector<8x16xf32>
    %124 = arith.cmpf oge, %123, %77 : vector<8x16xf32>
    %125 = arith.extui %124 : vector<8x16xi1> to vector<8x16xi32>
    %126 = arith.sitofp %125 : vector<8x16xi32> to vector<8x16xf32>
    %127 = arith.addf %91, %126 : vector<8x16xf32>
    %128 = vector.broadcast %122 : vector<8x1xf32> to vector<8x16xf32>
    %129 = arith.mulf %126, %128 : vector<8x16xf32>
    %130 = arith.addf %94, %129 : vector<8x16xf32>
    %131 = vector.extract_strided_slice %77 {offsets = [0, 5], sizes = [8, 1], strides = [1, 1]} : vector<8x16xf32> to vector<8x1xf32>
    %132 = vector.broadcast %131 : vector<8x1xf32> to vector<8x16xf32>
    %133 = arith.cmpf oge, %132, %77 : vector<8x16xf32>
    %134 = arith.extui %133 : vector<8x16xi1> to vector<8x16xi32>
    %135 = arith.sitofp %134 : vector<8x16xi32> to vector<8x16xf32>
    %136 = arith.addf %100, %135 : vector<8x16xf32>
    %137 = vector.broadcast %131 : vector<8x1xf32> to vector<8x16xf32>
    %138 = arith.mulf %135, %137 : vector<8x16xf32>
    %139 = arith.addf %103, %138 : vector<8x16xf32>
    %140 = vector.extract_strided_slice %77 {offsets = [0, 6], sizes = [8, 1], strides = [1, 1]} : vector<8x16xf32> to vector<8x1xf32>
    %141 = vector.broadcast %140 : vector<8x1xf32> to vector<8x16xf32>
    %142 = arith.cmpf oge, %141, %77 : vector<8x16xf32>
    %143 = arith.extui %142 : vector<8x16xi1> to vector<8x16xi32>
    %144 = arith.sitofp %143 : vector<8x16xi32> to vector<8x16xf32>
    %145 = arith.addf %109, %144 : vector<8x16xf32>
    %146 = vector.broadcast %140 : vector<8x1xf32> to vector<8x16xf32>
    %147 = arith.mulf %144, %146 : vector<8x16xf32>
    %148 = arith.addf %112, %147 : vector<8x16xf32>
    %149 = vector.extract_strided_slice %77 {offsets = [0, 7], sizes = [8, 1], strides = [1, 1]} : vector<8x16xf32> to vector<8x1xf32>
    %150 = vector.broadcast %149 : vector<8x1xf32> to vector<8x16xf32>
    %151 = arith.cmpf oge, %150, %77 : vector<8x16xf32>
    %152 = arith.extui %151 : vector<8x16xi1> to vector<8x16xi32>
    %153 = arith.sitofp %152 : vector<8x16xi32> to vector<8x16xf32>
    %154 = arith.addf %118, %153 : vector<8x16xf32>
    %155 = vector.broadcast %149 : vector<8x1xf32> to vector<8x16xf32>
    %156 = arith.mulf %153, %155 : vector<8x16xf32>
    %157 = arith.addf %121, %156 : vector<8x16xf32>
    %158 = vector.extract_strided_slice %77 {offsets = [0, 8], sizes = [8, 1], strides = [1, 1]} : vector<8x16xf32> to vector<8x1xf32>
    %159 = vector.broadcast %158 : vector<8x1xf32> to vector<8x16xf32>
    %160 = arith.cmpf oge, %159, %77 : vector<8x16xf32>
    %161 = arith.extui %160 : vector<8x16xi1> to vector<8x16xi32>
    %162 = arith.sitofp %161 : vector<8x16xi32> to vector<8x16xf32>
    %163 = arith.addf %127, %162 : vector<8x16xf32>
    %164 = vector.broadcast %158 : vector<8x1xf32> to vector<8x16xf32>
    %165 = arith.mulf %162, %164 : vector<8x16xf32>
    %166 = arith.addf %130, %165 : vector<8x16xf32>
    %167 = vector.extract_strided_slice %77 {offsets = [0, 9], sizes = [8, 1], strides = [1, 1]} : vector<8x16xf32> to vector<8x1xf32>
    %168 = vector.broadcast %167 : vector<8x1xf32> to vector<8x16xf32>
    %169 = arith.cmpf oge, %168, %77 : vector<8x16xf32>
    %170 = arith.extui %169 : vector<8x16xi1> to vector<8x16xi32>
    %171 = arith.sitofp %170 : vector<8x16xi32> to vector<8x16xf32>
    %172 = arith.addf %136, %171 : vector<8x16xf32>
    %173 = vector.broadcast %167 : vector<8x1xf32> to vector<8x16xf32>
    %174 = arith.mulf %171, %173 : vector<8x16xf32>
    %175 = arith.addf %139, %174 : vector<8x16xf32>
    %176 = vector.extract_strided_slice %77 {offsets = [0, 10], sizes = [8, 1], strides = [1, 1]} : vector<8x16xf32> to vector<8x1xf32>
    %177 = vector.broadcast %176 : vector<8x1xf32> to vector<8x16xf32>
    %178 = arith.cmpf oge, %177, %77 : vector<8x16xf32>
    %179 = arith.extui %178 : vector<8x16xi1> to vector<8x16xi32>
    %180 = arith.sitofp %179 : vector<8x16xi32> to vector<8x16xf32>
    %181 = arith.addf %145, %180 : vector<8x16xf32>
    %182 = vector.broadcast %176 : vector<8x1xf32> to vector<8x16xf32>
    %183 = arith.mulf %180, %182 : vector<8x16xf32>
    %184 = arith.addf %148, %183 : vector<8x16xf32>
    %185 = vector.extract_strided_slice %77 {offsets = [0, 11], sizes = [8, 1], strides = [1, 1]} : vector<8x16xf32> to vector<8x1xf32>
    %186 = vector.broadcast %185 : vector<8x1xf32> to vector<8x16xf32>
    %187 = arith.cmpf oge, %186, %77 : vector<8x16xf32>
    %188 = arith.extui %187 : vector<8x16xi1> to vector<8x16xi32>
    %189 = arith.sitofp %188 : vector<8x16xi32> to vector<8x16xf32>
    %190 = arith.addf %154, %189 : vector<8x16xf32>
    %191 = vector.broadcast %185 : vector<8x1xf32> to vector<8x16xf32>
    %192 = arith.mulf %189, %191 : vector<8x16xf32>
    %193 = arith.addf %157, %192 : vector<8x16xf32>
    %194 = vector.extract_strided_slice %77 {offsets = [0, 12], sizes = [8, 1], strides = [1, 1]} : vector<8x16xf32> to vector<8x1xf32>
    %195 = vector.broadcast %194 : vector<8x1xf32> to vector<8x16xf32>
    %196 = arith.cmpf oge, %195, %77 : vector<8x16xf32>
    %197 = arith.extui %196 : vector<8x16xi1> to vector<8x16xi32>
    %198 = arith.sitofp %197 : vector<8x16xi32> to vector<8x16xf32>
    %199 = arith.addf %163, %198 : vector<8x16xf32>
    %200 = vector.broadcast %194 : vector<8x1xf32> to vector<8x16xf32>
    %201 = arith.mulf %198, %200 : vector<8x16xf32>
    %202 = arith.addf %166, %201 : vector<8x16xf32>
    %203 = vector.extract_strided_slice %77 {offsets = [0, 13], sizes = [8, 1], strides = [1, 1]} : vector<8x16xf32> to vector<8x1xf32>
    %204 = vector.broadcast %203 : vector<8x1xf32> to vector<8x16xf32>
    %205 = arith.cmpf oge, %204, %77 : vector<8x16xf32>
    %206 = arith.extui %205 : vector<8x16xi1> to vector<8x16xi32>
    %207 = arith.sitofp %206 : vector<8x16xi32> to vector<8x16xf32>
    %208 = arith.addf %172, %207 : vector<8x16xf32>
    %209 = vector.broadcast %203 : vector<8x1xf32> to vector<8x16xf32>
    %210 = arith.mulf %207, %209 : vector<8x16xf32>
    %211 = arith.addf %175, %210 : vector<8x16xf32>
    %212 = vector.extract_strided_slice %77 {offsets = [0, 14], sizes = [8, 1], strides = [1, 1]} : vector<8x16xf32> to vector<8x1xf32>
    %213 = vector.broadcast %212 : vector<8x1xf32> to vector<8x16xf32>
    %214 = arith.cmpf oge, %213, %77 : vector<8x16xf32>
    %215 = arith.extui %214 : vector<8x16xi1> to vector<8x16xi32>
    %216 = arith.sitofp %215 : vector<8x16xi32> to vector<8x16xf32>
    %217 = arith.addf %181, %216 : vector<8x16xf32>
    %218 = vector.broadcast %212 : vector<8x1xf32> to vector<8x16xf32>
    %219 = arith.mulf %216, %218 : vector<8x16xf32>
    %220 = arith.addf %184, %219 : vector<8x16xf32>
    %221 = vector.extract_strided_slice %77 {offsets = [0, 15], sizes = [8, 1], strides = [1, 1]} : vector<8x16xf32> to vector<8x1xf32>
    %222 = vector.broadcast %221 : vector<8x1xf32> to vector<8x16xf32>
    %223 = arith.cmpf oge, %222, %77 : vector<8x16xf32>
    %224 = arith.extui %223 : vector<8x16xi1> to vector<8x16xi32>
    %225 = arith.sitofp %224 : vector<8x16xi32> to vector<8x16xf32>
    %226 = arith.addf %190, %225 : vector<8x16xf32>
    %227 = vector.broadcast %221 : vector<8x1xf32> to vector<8x16xf32>
    %228 = arith.mulf %225, %227 : vector<8x16xf32>
    %229 = arith.addf %193, %228 : vector<8x16xf32>
    %230 = arith.addf %199, %208 : vector<8x16xf32>
    %231 = arith.addf %217, %226 : vector<8x16xf32>
    %232 = arith.addf %230, %231 : vector<8x16xf32>
    %233 = arith.addf %202, %211 : vector<8x16xf32>
    %234 = arith.addf %220, %229 : vector<8x16xf32>
    %235 = arith.addf %233, %234 : vector<8x16xf32>
    %236 = arith.mulf %232, %77 : vector<8x16xf32>
    %cst_43 = arith.constant 1.000000e+00 : f32
    %237 = vector.broadcast %cst_43 : f32 to vector<8x16xf32>
    %238 = arith.addf %237, %236 : vector<8x16xf32>
    %239 = arith.cmpf ogt, %238, %235 : vector<8x16xf32>
    %240 = arith.extui %239 : vector<8x16xi1> to vector<8x16xi32>
    %241 = arith.sitofp %240 : vector<8x16xi32> to vector<8x16xf32>
    %cst_44 = arith.constant dense<0.000000e+00> : vector<8xf32>
    %242 = vector.multi_reduction <add>, %241, %cst_44 [1] : vector<8x16xf32> to vector<8xf32>
    %243 = vector.shape_cast %242 : vector<8xf32> to vector<8x1xf32>
    %244 = arith.mulf %241, %77 : vector<8x16xf32>
    %cst_45 = arith.constant dense<0.000000e+00> : vector<8xf32>
    %245 = vector.multi_reduction <add>, %244, %cst_45 [1] : vector<8x16xf32> to vector<8xf32>
    %246 = vector.shape_cast %245 : vector<8xf32> to vector<8x1xf32>
    %cst_46 = arith.constant 1.000000e+00 : f32
    %247 = vector.broadcast %cst_46 : f32 to vector<8x1xf32>
    %248 = arith.subf %246, %247 : vector<8x1xf32>
    %249 = arith.divf %248, %243 : vector<8x1xf32>
    %250 = vector.broadcast %249 : vector<8x1xf32> to vector<8x16xf32>
    %251 = arith.subf %77, %250 : vector<8x16xf32>
    %cst_47 = arith.constant 0.000000e+00 : f32
    %252 = vector.broadcast %cst_47 : f32 to vector<8x16xf32>
    %253 = arith.maximumf %251, %252 : vector<8x16xf32>
    %cst_48 = arith.constant 0.000000e+00 : f32
    %254 = vector.broadcast %cst_48 : f32 to vector<8x16xf32>
    %255 = arith.subf %254, %253 : vector<8x16xf32>
    %cst_49 = arith.constant 1.000000e-10 : f32
    %256 = vector.broadcast %cst_49 : f32 to vector<8x16xf32>
    %257 = arith.addf %253, %256 : vector<8x16xf32>
    %258 = math.log %257 : vector<8x16xf32>
    %259 = arith.mulf %255, %258 : vector<8x16xf32>
    %260 = vector.shape_cast %259 : vector<8x16xf32> to vector<1x8x16xf32>
    %cst_50 = arith.constant dense<0.000000e+00> : vector<1xf32>
    %261 = vector.multi_reduction <add>, %260, %cst_50 [1, 2] : vector<1x8x16xf32> to vector<1xf32>
    %262 = vector.shape_cast %261 : vector<1xf32> to vector<1x1x1xf32>
    %263 = vector.extract %262[0, 0, 0] : f32 from vector<1x1x1xf32>
    %cst_51 = arith.constant 7.812500e-03 : f32
    %264 = arith.mulf %263, %cst_51 : f32
    %cst_52 = arith.constant 0.000000e+00 : f32
    %265 = arith.addf %cst_52, %264 : f32
    %266 = arith.mulf %6, %253 : vector<8x16xf32>
    %c0_53 = arith.constant 0 : index
    %c128 = arith.constant 128 : index
    %267 = vector.load %arg1[%c0_53, %c128] : memref<16x640xf32, #tpu.memory_space<vmem>>, vector<16x32xf32>
    %c0_54 = arith.constant 0 : index
    %c128_55 = arith.constant 128 : index
    %268 = vector.load %arg2[%c0_54, %c128_55] : memref<1x640xf32, #tpu.memory_space<vmem>>, vector<1x32xf32>
    %cst_56 = arith.constant dense<0.000000e+00> : vector<8x32xf32>
    %269 = tpu.matmul %266, %267, %cst_56 {dimension_numbers = #tpu.dot_dimension_numbers<[1], [0], [0], [1], [0, 0, 1, 1], [], []>} : vector<8x16xf32>, vector<16x32xf32>, vector<8x32xf32> -> vector<8x32xf32>
    %270 = vector.broadcast %268 : vector<1x32xf32> to vector<8x32xf32>
    %271 = arith.addf %269, %270 : vector<8x32xf32>
    %272 = vector.extract_strided_slice %271 {offsets = [0, 16], sizes = [8, 16], strides = [1, 1]} : vector<8x32xf32> to vector<8x16xf32>
    %cst_57 = arith.constant 0.000000e+00 : f32
    %273 = vector.broadcast %cst_57 : f32 to vector<8x16xf32>
    %274 = arith.subf %273, %272 : vector<8x16xf32>
    %275 = math.exp %274 : vector<8x16xf32>
    %cst_58 = arith.constant 1.000000e+00 : f32
    %276 = vector.broadcast %cst_58 : f32 to vector<8x16xf32>
    %277 = arith.addf %276, %275 : vector<8x16xf32>
    %278 = tpu.reciprocal %277 {approx = true} : vector<8x16xf32> -> vector<8x16xf32>
    %279 = vector.extract_strided_slice %271 {offsets = [0, 0], sizes = [8, 16], strides = [1, 1]} : vector<8x32xf32> to vector<8x16xf32>
    %280 = arith.mulf %279, %278 : vector<8x16xf32>
    %c0_59 = arith.constant 0 : index
    %c160 = arith.constant 160 : index
    %281 = vector.load %arg1[%c0_59, %c160] : memref<16x640xf32, #tpu.memory_space<vmem>>, vector<16x32xf32>
    %c0_60 = arith.constant 0 : index
    %c160_61 = arith.constant 160 : index
    %282 = vector.load %arg2[%c0_60, %c160_61] : memref<1x640xf32, #tpu.memory_space<vmem>>, vector<1x32xf32>
    %cst_62 = arith.constant dense<0.000000e+00> : vector<8x32xf32>
    %283 = tpu.matmul %280, %281, %cst_62 {dimension_numbers = #tpu.dot_dimension_numbers<[1], [0], [0], [1], [0, 0, 1, 1], [], []>} : vector<8x16xf32>, vector<16x32xf32>, vector<8x32xf32> -> vector<8x32xf32>
    %284 = vector.broadcast %282 : vector<1x32xf32> to vector<8x32xf32>
    %285 = arith.addf %283, %284 : vector<8x32xf32>
    %286 = vector.extract_strided_slice %285 {offsets = [0, 16], sizes = [8, 16], strides = [1, 1]} : vector<8x32xf32> to vector<8x16xf32>
    %cst_63 = arith.constant 0.000000e+00 : f32
    %287 = vector.broadcast %cst_63 : f32 to vector<8x16xf32>
    %288 = arith.subf %287, %286 : vector<8x16xf32>
    %289 = math.exp %288 : vector<8x16xf32>
    %cst_64 = arith.constant 1.000000e+00 : f32
    %290 = vector.broadcast %cst_64 : f32 to vector<8x16xf32>
    %291 = arith.addf %290, %289 : vector<8x16xf32>
    %292 = tpu.reciprocal %291 {approx = true} : vector<8x16xf32> -> vector<8x16xf32>
    %293 = vector.extract_strided_slice %285 {offsets = [0, 0], sizes = [8, 16], strides = [1, 1]} : vector<8x32xf32> to vector<8x16xf32>
    %294 = arith.mulf %293, %292 : vector<8x16xf32>
    %295 = arith.addf %280, %294 : vector<8x16xf32>
    %cst_65 = arith.constant 0.707106769 : f32
    %296 = vector.broadcast %cst_65 : f32 to vector<8x16xf32>
    %297 = arith.mulf %295, %296 : vector<8x16xf32>
    %c0_66 = arith.constant 0 : index
    %c192 = arith.constant 192 : index
    %298 = vector.load %arg1[%c0_66, %c192] : memref<16x640xf32, #tpu.memory_space<vmem>>, vector<16x32xf32>
    %c0_67 = arith.constant 0 : index
    %c192_68 = arith.constant 192 : index
    %299 = vector.load %arg2[%c0_67, %c192_68] : memref<1x640xf32, #tpu.memory_space<vmem>>, vector<1x32xf32>
    %cst_69 = arith.constant dense<0.000000e+00> : vector<8x32xf32>
    %300 = tpu.matmul %297, %298, %cst_69 {dimension_numbers = #tpu.dot_dimension_numbers<[1], [0], [0], [1], [0, 0, 1, 1], [], []>} : vector<8x16xf32>, vector<16x32xf32>, vector<8x32xf32> -> vector<8x32xf32>
    %301 = vector.broadcast %299 : vector<1x32xf32> to vector<8x32xf32>
    %302 = arith.addf %300, %301 : vector<8x32xf32>
    %303 = vector.extract_strided_slice %302 {offsets = [0, 16], sizes = [8, 16], strides = [1, 1]} : vector<8x32xf32> to vector<8x16xf32>
    %cst_70 = arith.constant 0.000000e+00 : f32
    %304 = vector.broadcast %cst_70 : f32 to vector<8x16xf32>
    %305 = arith.subf %304, %303 : vector<8x16xf32>
    %306 = math.exp %305 : vector<8x16xf32>
    %cst_71 = arith.constant 1.000000e+00 : f32
    %307 = vector.broadcast %cst_71 : f32 to vector<8x16xf32>
    %308 = arith.addf %307, %306 : vector<8x16xf32>
    %309 = tpu.reciprocal %308 {approx = true} : vector<8x16xf32> -> vector<8x16xf32>
    %310 = vector.extract_strided_slice %302 {offsets = [0, 0], sizes = [8, 16], strides = [1, 1]} : vector<8x32xf32> to vector<8x16xf32>
    %311 = arith.mulf %310, %309 : vector<8x16xf32>
    %312 = arith.addf %297, %311 : vector<8x16xf32>
    %cst_72 = arith.constant 0.707106769 : f32
    %313 = vector.broadcast %cst_72 : f32 to vector<8x16xf32>
    %314 = arith.mulf %312, %313 : vector<8x16xf32>
    %c0_73 = arith.constant 0 : index
    %c224 = arith.constant 224 : index
    %315 = vector.load %arg1[%c0_73, %c224] : memref<16x640xf32, #tpu.memory_space<vmem>>, vector<16x32xf32>
    %c0_74 = arith.constant 0 : index
    %c224_75 = arith.constant 224 : index
    %316 = vector.load %arg2[%c0_74, %c224_75] : memref<1x640xf32, #tpu.memory_space<vmem>>, vector<1x32xf32>
    %cst_76 = arith.constant dense<0.000000e+00> : vector<8x32xf32>
    %317 = tpu.matmul %314, %315, %cst_76 {dimension_numbers = #tpu.dot_dimension_numbers<[1], [0], [0], [1], [0, 0, 1, 1], [], []>} : vector<8x16xf32>, vector<16x32xf32>, vector<8x32xf32> -> vector<8x32xf32>
    %318 = vector.broadcast %316 : vector<1x32xf32> to vector<8x32xf32>
    %319 = arith.addf %317, %318 : vector<8x32xf32>
    %320 = vector.extract_strided_slice %319 {offsets = [0, 16], sizes = [8, 16], strides = [1, 1]} : vector<8x32xf32> to vector<8x16xf32>
    %cst_77 = arith.constant 0.000000e+00 : f32
    %321 = vector.broadcast %cst_77 : f32 to vector<8x16xf32>
    %322 = arith.subf %321, %320 : vector<8x16xf32>
    %323 = math.exp %322 : vector<8x16xf32>
    %cst_78 = arith.constant 1.000000e+00 : f32
    %324 = vector.broadcast %cst_78 : f32 to vector<8x16xf32>
    %325 = arith.addf %324, %323 : vector<8x16xf32>
    %326 = tpu.reciprocal %325 {approx = true} : vector<8x16xf32> -> vector<8x16xf32>
    %327 = vector.extract_strided_slice %319 {offsets = [0, 0], sizes = [8, 16], strides = [1, 1]} : vector<8x32xf32> to vector<8x16xf32>
    %328 = arith.mulf %327, %326 : vector<8x16xf32>
    %329 = arith.addf %314, %328 : vector<8x16xf32>
    %cst_79 = arith.constant 0.707106769 : f32
    %330 = vector.broadcast %cst_79 : f32 to vector<8x16xf32>
    %331 = arith.mulf %329, %330 : vector<8x16xf32>
    %cst_80 = arith.constant 0.000000e+00 : f32
    %332 = vector.broadcast %cst_80 : f32 to vector<8x16xf32>
    %333 = arith.maximumf %331, %332 : vector<8x16xf32>
    %334 = arith.addf %72, %333 : vector<8x16xf32>
    %c0_81 = arith.constant 0 : index
    %c400_82 = arith.constant 400 : index
    %335 = vector.load %arg1[%c0_81, %c400_82] : memref<16x640xf32, #tpu.memory_space<vmem>>, vector<16x16xf32>
    %c0_83 = arith.constant 0 : index
    %c432 = arith.constant 432 : index
    %336 = vector.load %arg2[%c0_83, %c432] : memref<1x640xf32, #tpu.memory_space<vmem>>, vector<1x16xf32>
    %cst_84 = arith.constant dense<0.000000e+00> : vector<8x16xf32>
    %337 = tpu.matmul %331, %335, %cst_84 {dimension_numbers = #tpu.dot_dimension_numbers<[1], [0], [0], [1], [0, 0, 1, 1], [], []>} : vector<8x16xf32>, vector<16x16xf32>, vector<8x16xf32> -> vector<8x16xf32>
    %338 = vector.broadcast %336 : vector<1x16xf32> to vector<8x16xf32>
    %339 = arith.addf %337, %338 : vector<8x16xf32>
    %cst_85 = arith.constant 0.000000e+00 : f32
    %340 = vector.broadcast %cst_85 : f32 to vector<8x16xf32>
    %cst_86 = arith.constant 0.000000e+00 : f32
    %341 = vector.broadcast %cst_86 : f32 to vector<8x16xf32>
    %cst_87 = arith.constant 0.000000e+00 : f32
    %342 = vector.broadcast %cst_87 : f32 to vector<8x16xf32>
    %cst_88 = arith.constant 0.000000e+00 : f32
    %343 = vector.broadcast %cst_88 : f32 to vector<8x16xf32>
    %cst_89 = arith.constant 0.000000e+00 : f32
    %344 = vector.broadcast %cst_89 : f32 to vector<8x16xf32>
    %cst_90 = arith.constant 0.000000e+00 : f32
    %345 = vector.broadcast %cst_90 : f32 to vector<8x16xf32>
    %cst_91 = arith.constant 0.000000e+00 : f32
    %346 = vector.broadcast %cst_91 : f32 to vector<8x16xf32>
    %cst_92 = arith.constant 0.000000e+00 : f32
    %347 = vector.broadcast %cst_92 : f32 to vector<8x16xf32>
    %348 = vector.extract_strided_slice %339 {offsets = [0, 0], sizes = [8, 1], strides = [1, 1]} : vector<8x16xf32> to vector<8x1xf32>
    %349 = vector.broadcast %348 : vector<8x1xf32> to vector<8x16xf32>
    %350 = arith.cmpf oge, %349, %339 : vector<8x16xf32>
    %351 = arith.extui %350 : vector<8x16xi1> to vector<8x16xi32>
    %352 = arith.sitofp %351 : vector<8x16xi32> to vector<8x16xf32>
    %353 = arith.addf %340, %352 : vector<8x16xf32>
    %354 = vector.broadcast %348 : vector<8x1xf32> to vector<8x16xf32>
    %355 = arith.mulf %352, %354 : vector<8x16xf32>
    %356 = arith.addf %344, %355 : vector<8x16xf32>
    %357 = vector.extract_strided_slice %339 {offsets = [0, 1], sizes = [8, 1], strides = [1, 1]} : vector<8x16xf32> to vector<8x1xf32>
    %358 = vector.broadcast %357 : vector<8x1xf32> to vector<8x16xf32>
    %359 = arith.cmpf oge, %358, %339 : vector<8x16xf32>
    %360 = arith.extui %359 : vector<8x16xi1> to vector<8x16xi32>
    %361 = arith.sitofp %360 : vector<8x16xi32> to vector<8x16xf32>
    %362 = arith.addf %341, %361 : vector<8x16xf32>
    %363 = vector.broadcast %357 : vector<8x1xf32> to vector<8x16xf32>
    %364 = arith.mulf %361, %363 : vector<8x16xf32>
    %365 = arith.addf %345, %364 : vector<8x16xf32>
    %366 = vector.extract_strided_slice %339 {offsets = [0, 2], sizes = [8, 1], strides = [1, 1]} : vector<8x16xf32> to vector<8x1xf32>
    %367 = vector.broadcast %366 : vector<8x1xf32> to vector<8x16xf32>
    %368 = arith.cmpf oge, %367, %339 : vector<8x16xf32>
    %369 = arith.extui %368 : vector<8x16xi1> to vector<8x16xi32>
    %370 = arith.sitofp %369 : vector<8x16xi32> to vector<8x16xf32>
    %371 = arith.addf %342, %370 : vector<8x16xf32>
    %372 = vector.broadcast %366 : vector<8x1xf32> to vector<8x16xf32>
    %373 = arith.mulf %370, %372 : vector<8x16xf32>
    %374 = arith.addf %346, %373 : vector<8x16xf32>
    %375 = vector.extract_strided_slice %339 {offsets = [0, 3], sizes = [8, 1], strides = [1, 1]} : vector<8x16xf32> to vector<8x1xf32>
    %376 = vector.broadcast %375 : vector<8x1xf32> to vector<8x16xf32>
    %377 = arith.cmpf oge, %376, %339 : vector<8x16xf32>
    %378 = arith.extui %377 : vector<8x16xi1> to vector<8x16xi32>
    %379 = arith.sitofp %378 : vector<8x16xi32> to vector<8x16xf32>
    %380 = arith.addf %343, %379 : vector<8x16xf32>
    %381 = vector.broadcast %375 : vector<8x1xf32> to vector<8x16xf32>
    %382 = arith.mulf %379, %381 : vector<8x16xf32>
    %383 = arith.addf %347, %382 : vector<8x16xf32>
    %384 = vector.extract_strided_slice %339 {offsets = [0, 4], sizes = [8, 1], strides = [1, 1]} : vector<8x16xf32> to vector<8x1xf32>
    %385 = vector.broadcast %384 : vector<8x1xf32> to vector<8x16xf32>
    %386 = arith.cmpf oge, %385, %339 : vector<8x16xf32>
    %387 = arith.extui %386 : vector<8x16xi1> to vector<8x16xi32>
    %388 = arith.sitofp %387 : vector<8x16xi32> to vector<8x16xf32>
    %389 = arith.addf %353, %388 : vector<8x16xf32>
    %390 = vector.broadcast %384 : vector<8x1xf32> to vector<8x16xf32>
    %391 = arith.mulf %388, %390 : vector<8x16xf32>
    %392 = arith.addf %356, %391 : vector<8x16xf32>
    %393 = vector.extract_strided_slice %339 {offsets = [0, 5], sizes = [8, 1], strides = [1, 1]} : vector<8x16xf32> to vector<8x1xf32>
    %394 = vector.broadcast %393 : vector<8x1xf32> to vector<8x16xf32>
    %395 = arith.cmpf oge, %394, %339 : vector<8x16xf32>
    %396 = arith.extui %395 : vector<8x16xi1> to vector<8x16xi32>
    %397 = arith.sitofp %396 : vector<8x16xi32> to vector<8x16xf32>
    %398 = arith.addf %362, %397 : vector<8x16xf32>
    %399 = vector.broadcast %393 : vector<8x1xf32> to vector<8x16xf32>
    %400 = arith.mulf %397, %399 : vector<8x16xf32>
    %401 = arith.addf %365, %400 : vector<8x16xf32>
    %402 = vector.extract_strided_slice %339 {offsets = [0, 6], sizes = [8, 1], strides = [1, 1]} : vector<8x16xf32> to vector<8x1xf32>
    %403 = vector.broadcast %402 : vector<8x1xf32> to vector<8x16xf32>
    %404 = arith.cmpf oge, %403, %339 : vector<8x16xf32>
    %405 = arith.extui %404 : vector<8x16xi1> to vector<8x16xi32>
    %406 = arith.sitofp %405 : vector<8x16xi32> to vector<8x16xf32>
    %407 = arith.addf %371, %406 : vector<8x16xf32>
    %408 = vector.broadcast %402 : vector<8x1xf32> to vector<8x16xf32>
    %409 = arith.mulf %406, %408 : vector<8x16xf32>
    %410 = arith.addf %374, %409 : vector<8x16xf32>
    %411 = vector.extract_strided_slice %339 {offsets = [0, 7], sizes = [8, 1], strides = [1, 1]} : vector<8x16xf32> to vector<8x1xf32>
    %412 = vector.broadcast %411 : vector<8x1xf32> to vector<8x16xf32>
    %413 = arith.cmpf oge, %412, %339 : vector<8x16xf32>
    %414 = arith.extui %413 : vector<8x16xi1> to vector<8x16xi32>
    %415 = arith.sitofp %414 : vector<8x16xi32> to vector<8x16xf32>
    %416 = arith.addf %380, %415 : vector<8x16xf32>
    %417 = vector.broadcast %411 : vector<8x1xf32> to vector<8x16xf32>
    %418 = arith.mulf %415, %417 : vector<8x16xf32>
    %419 = arith.addf %383, %418 : vector<8x16xf32>
    %420 = vector.extract_strided_slice %339 {offsets = [0, 8], sizes = [8, 1], strides = [1, 1]} : vector<8x16xf32> to vector<8x1xf32>
    %421 = vector.broadcast %420 : vector<8x1xf32> to vector<8x16xf32>
    %422 = arith.cmpf oge, %421, %339 : vector<8x16xf32>
    %423 = arith.extui %422 : vector<8x16xi1> to vector<8x16xi32>
    %424 = arith.sitofp %423 : vector<8x16xi32> to vector<8x16xf32>
    %425 = arith.addf %389, %424 : vector<8x16xf32>
    %426 = vector.broadcast %420 : vector<8x1xf32> to vector<8x16xf32>
    %427 = arith.mulf %424, %426 : vector<8x16xf32>
    %428 = arith.addf %392, %427 : vector<8x16xf32>
    %429 = vector.extract_strided_slice %339 {offsets = [0, 9], sizes = [8, 1], strides = [1, 1]} : vector<8x16xf32> to vector<8x1xf32>
    %430 = vector.broadcast %429 : vector<8x1xf32> to vector<8x16xf32>
    %431 = arith.cmpf oge, %430, %339 : vector<8x16xf32>
    %432 = arith.extui %431 : vector<8x16xi1> to vector<8x16xi32>
    %433 = arith.sitofp %432 : vector<8x16xi32> to vector<8x16xf32>
    %434 = arith.addf %398, %433 : vector<8x16xf32>
    %435 = vector.broadcast %429 : vector<8x1xf32> to vector<8x16xf32>
    %436 = arith.mulf %433, %435 : vector<8x16xf32>
    %437 = arith.addf %401, %436 : vector<8x16xf32>
    %438 = vector.extract_strided_slice %339 {offsets = [0, 10], sizes = [8, 1], strides = [1, 1]} : vector<8x16xf32> to vector<8x1xf32>
    %439 = vector.broadcast %438 : vector<8x1xf32> to vector<8x16xf32>
    %440 = arith.cmpf oge, %439, %339 : vector<8x16xf32>
    %441 = arith.extui %440 : vector<8x16xi1> to vector<8x16xi32>
    %442 = arith.sitofp %441 : vector<8x16xi32> to vector<8x16xf32>
    %443 = arith.addf %407, %442 : vector<8x16xf32>
    %444 = vector.broadcast %438 : vector<8x1xf32> to vector<8x16xf32>
    %445 = arith.mulf %442, %444 : vector<8x16xf32>
    %446 = arith.addf %410, %445 : vector<8x16xf32>
    %447 = vector.extract_strided_slice %339 {offsets = [0, 11], sizes = [8, 1], strides = [1, 1]} : vector<8x16xf32> to vector<8x1xf32>
    %448 = vector.broadcast %447 : vector<8x1xf32> to vector<8x16xf32>
    %449 = arith.cmpf oge, %448, %339 : vector<8x16xf32>
    %450 = arith.extui %449 : vector<8x16xi1> to vector<8x16xi32>
    %451 = arith.sitofp %450 : vector<8x16xi32> to vector<8x16xf32>
    %452 = arith.addf %416, %451 : vector<8x16xf32>
    %453 = vector.broadcast %447 : vector<8x1xf32> to vector<8x16xf32>
    %454 = arith.mulf %451, %453 : vector<8x16xf32>
    %455 = arith.addf %419, %454 : vector<8x16xf32>
    %456 = vector.extract_strided_slice %339 {offsets = [0, 12], sizes = [8, 1], strides = [1, 1]} : vector<8x16xf32> to vector<8x1xf32>
    %457 = vector.broadcast %456 : vector<8x1xf32> to vector<8x16xf32>
    %458 = arith.cmpf oge, %457, %339 : vector<8x16xf32>
    %459 = arith.extui %458 : vector<8x16xi1> to vector<8x16xi32>
    %460 = arith.sitofp %459 : vector<8x16xi32> to vector<8x16xf32>
    %461 = arith.addf %425, %460 : vector<8x16xf32>
    %462 = vector.broadcast %456 : vector<8x1xf32> to vector<8x16xf32>
    %463 = arith.mulf %460, %462 : vector<8x16xf32>
    %464 = arith.addf %428, %463 : vector<8x16xf32>
    %465 = vector.extract_strided_slice %339 {offsets = [0, 13], sizes = [8, 1], strides = [1, 1]} : vector<8x16xf32> to vector<8x1xf32>
    %466 = vector.broadcast %465 : vector<8x1xf32> to vector<8x16xf32>
    %467 = arith.cmpf oge, %466, %339 : vector<8x16xf32>
    %468 = arith.extui %467 : vector<8x16xi1> to vector<8x16xi32>
    %469 = arith.sitofp %468 : vector<8x16xi32> to vector<8x16xf32>
    %470 = arith.addf %434, %469 : vector<8x16xf32>
    %471 = vector.broadcast %465 : vector<8x1xf32> to vector<8x16xf32>
    %472 = arith.mulf %469, %471 : vector<8x16xf32>
    %473 = arith.addf %437, %472 : vector<8x16xf32>
    %474 = vector.extract_strided_slice %339 {offsets = [0, 14], sizes = [8, 1], strides = [1, 1]} : vector<8x16xf32> to vector<8x1xf32>
    %475 = vector.broadcast %474 : vector<8x1xf32> to vector<8x16xf32>
    %476 = arith.cmpf oge, %475, %339 : vector<8x16xf32>
    %477 = arith.extui %476 : vector<8x16xi1> to vector<8x16xi32>
    %478 = arith.sitofp %477 : vector<8x16xi32> to vector<8x16xf32>
    %479 = arith.addf %443, %478 : vector<8x16xf32>
    %480 = vector.broadcast %474 : vector<8x1xf32> to vector<8x16xf32>
    %481 = arith.mulf %478, %480 : vector<8x16xf32>
    %482 = arith.addf %446, %481 : vector<8x16xf32>
    %483 = vector.extract_strided_slice %339 {offsets = [0, 15], sizes = [8, 1], strides = [1, 1]} : vector<8x16xf32> to vector<8x1xf32>
    %484 = vector.broadcast %483 : vector<8x1xf32> to vector<8x16xf32>
    %485 = arith.cmpf oge, %484, %339 : vector<8x16xf32>
    %486 = arith.extui %485 : vector<8x16xi1> to vector<8x16xi32>
    %487 = arith.sitofp %486 : vector<8x16xi32> to vector<8x16xf32>
    %488 = arith.addf %452, %487 : vector<8x16xf32>
    %489 = vector.broadcast %483 : vector<8x1xf32> to vector<8x16xf32>
    %490 = arith.mulf %487, %489 : vector<8x16xf32>
    %491 = arith.addf %455, %490 : vector<8x16xf32>
    %492 = arith.addf %461, %470 : vector<8x16xf32>
    %493 = arith.addf %479, %488 : vector<8x16xf32>
    %494 = arith.addf %492, %493 : vector<8x16xf32>
    %495 = arith.addf %464, %473 : vector<8x16xf32>
    %496 = arith.addf %482, %491 : vector<8x16xf32>
    %497 = arith.addf %495, %496 : vector<8x16xf32>
    %498 = arith.mulf %494, %339 : vector<8x16xf32>
    %cst_93 = arith.constant 1.000000e+00 : f32
    %499 = vector.broadcast %cst_93 : f32 to vector<8x16xf32>
    %500 = arith.addf %499, %498 : vector<8x16xf32>
    %501 = arith.cmpf ogt, %500, %497 : vector<8x16xf32>
    %502 = arith.extui %501 : vector<8x16xi1> to vector<8x16xi32>
    %503 = arith.sitofp %502 : vector<8x16xi32> to vector<8x16xf32>
    %cst_94 = arith.constant dense<0.000000e+00> : vector<8xf32>
    %504 = vector.multi_reduction <add>, %503, %cst_94 [1] : vector<8x16xf32> to vector<8xf32>
    %505 = vector.shape_cast %504 : vector<8xf32> to vector<8x1xf32>
    %506 = arith.mulf %503, %339 : vector<8x16xf32>
    %cst_95 = arith.constant dense<0.000000e+00> : vector<8xf32>
    %507 = vector.multi_reduction <add>, %506, %cst_95 [1] : vector<8x16xf32> to vector<8xf32>
    %508 = vector.shape_cast %507 : vector<8xf32> to vector<8x1xf32>
    %cst_96 = arith.constant 1.000000e+00 : f32
    %509 = vector.broadcast %cst_96 : f32 to vector<8x1xf32>
    %510 = arith.subf %508, %509 : vector<8x1xf32>
    %511 = arith.divf %510, %505 : vector<8x1xf32>
    %512 = vector.broadcast %511 : vector<8x1xf32> to vector<8x16xf32>
    %513 = arith.subf %339, %512 : vector<8x16xf32>
    %cst_97 = arith.constant 0.000000e+00 : f32
    %514 = vector.broadcast %cst_97 : f32 to vector<8x16xf32>
    %515 = arith.maximumf %513, %514 : vector<8x16xf32>
    %cst_98 = arith.constant 0.000000e+00 : f32
    %516 = vector.broadcast %cst_98 : f32 to vector<8x16xf32>
    %517 = arith.subf %516, %515 : vector<8x16xf32>
    %cst_99 = arith.constant 1.000000e-10 : f32
    %518 = vector.broadcast %cst_99 : f32 to vector<8x16xf32>
    %519 = arith.addf %515, %518 : vector<8x16xf32>
    %520 = math.log %519 : vector<8x16xf32>
    %521 = arith.mulf %517, %520 : vector<8x16xf32>
    %522 = vector.shape_cast %521 : vector<8x16xf32> to vector<1x8x16xf32>
    %cst_100 = arith.constant dense<0.000000e+00> : vector<1xf32>
    %523 = vector.multi_reduction <add>, %522, %cst_100 [1, 2] : vector<1x8x16xf32> to vector<1xf32>
    %524 = vector.shape_cast %523 : vector<1xf32> to vector<1x1x1xf32>
    %525 = vector.extract %524[0, 0, 0] : f32 from vector<1x1x1xf32>
    %cst_101 = arith.constant 7.812500e-03 : f32
    %526 = arith.mulf %525, %cst_101 : f32
    %527 = arith.addf %265, %526 : f32
    %528 = arith.mulf %6, %515 : vector<8x16xf32>
    %c0_102 = arith.constant 0 : index
    %c256 = arith.constant 256 : index
    %529 = vector.load %arg1[%c0_102, %c256] : memref<16x640xf32, #tpu.memory_space<vmem>>, vector<16x32xf32>
    %c0_103 = arith.constant 0 : index
    %c256_104 = arith.constant 256 : index
    %530 = vector.load %arg2[%c0_103, %c256_104] : memref<1x640xf32, #tpu.memory_space<vmem>>, vector<1x32xf32>
    %cst_105 = arith.constant dense<0.000000e+00> : vector<8x32xf32>
    %531 = tpu.matmul %528, %529, %cst_105 {dimension_numbers = #tpu.dot_dimension_numbers<[1], [0], [0], [1], [0, 0, 1, 1], [], []>} : vector<8x16xf32>, vector<16x32xf32>, vector<8x32xf32> -> vector<8x32xf32>
    %532 = vector.broadcast %530 : vector<1x32xf32> to vector<8x32xf32>
    %533 = arith.addf %531, %532 : vector<8x32xf32>
    %534 = vector.extract_strided_slice %533 {offsets = [0, 16], sizes = [8, 16], strides = [1, 1]} : vector<8x32xf32> to vector<8x16xf32>
    %cst_106 = arith.constant 0.000000e+00 : f32
    %535 = vector.broadcast %cst_106 : f32 to vector<8x16xf32>
    %536 = arith.subf %535, %534 : vector<8x16xf32>
    %537 = math.exp %536 : vector<8x16xf32>
    %cst_107 = arith.constant 1.000000e+00 : f32
    %538 = vector.broadcast %cst_107 : f32 to vector<8x16xf32>
    %539 = arith.addf %538, %537 : vector<8x16xf32>
    %540 = tpu.reciprocal %539 {approx = true} : vector<8x16xf32> -> vector<8x16xf32>
    %541 = vector.extract_strided_slice %533 {offsets = [0, 0], sizes = [8, 16], strides = [1, 1]} : vector<8x32xf32> to vector<8x16xf32>
    %542 = arith.mulf %541, %540 : vector<8x16xf32>
    %c0_108 = arith.constant 0 : index
    %c288 = arith.constant 288 : index
    %543 = vector.load %arg1[%c0_108, %c288] : memref<16x640xf32, #tpu.memory_space<vmem>>, vector<16x32xf32>
    %c0_109 = arith.constant 0 : index
    %c288_110 = arith.constant 288 : index
    %544 = vector.load %arg2[%c0_109, %c288_110] : memref<1x640xf32, #tpu.memory_space<vmem>>, vector<1x32xf32>
    %cst_111 = arith.constant dense<0.000000e+00> : vector<8x32xf32>
    %545 = tpu.matmul %542, %543, %cst_111 {dimension_numbers = #tpu.dot_dimension_numbers<[1], [0], [0], [1], [0, 0, 1, 1], [], []>} : vector<8x16xf32>, vector<16x32xf32>, vector<8x32xf32> -> vector<8x32xf32>
    %546 = vector.broadcast %544 : vector<1x32xf32> to vector<8x32xf32>
    %547 = arith.addf %545, %546 : vector<8x32xf32>
    %548 = vector.extract_strided_slice %547 {offsets = [0, 16], sizes = [8, 16], strides = [1, 1]} : vector<8x32xf32> to vector<8x16xf32>
    %cst_112 = arith.constant 0.000000e+00 : f32
    %549 = vector.broadcast %cst_112 : f32 to vector<8x16xf32>
    %550 = arith.subf %549, %548 : vector<8x16xf32>
    %551 = math.exp %550 : vector<8x16xf32>
    %cst_113 = arith.constant 1.000000e+00 : f32
    %552 = vector.broadcast %cst_113 : f32 to vector<8x16xf32>
    %553 = arith.addf %552, %551 : vector<8x16xf32>
    %554 = tpu.reciprocal %553 {approx = true} : vector<8x16xf32> -> vector<8x16xf32>
    %555 = vector.extract_strided_slice %547 {offsets = [0, 0], sizes = [8, 16], strides = [1, 1]} : vector<8x32xf32> to vector<8x16xf32>
    %556 = arith.mulf %555, %554 : vector<8x16xf32>
    %557 = arith.addf %542, %556 : vector<8x16xf32>
    %cst_114 = arith.constant 0.707106769 : f32
    %558 = vector.broadcast %cst_114 : f32 to vector<8x16xf32>
    %559 = arith.mulf %557, %558 : vector<8x16xf32>
    %c0_115 = arith.constant 0 : index
    %c320 = arith.constant 320 : index
    %560 = vector.load %arg1[%c0_115, %c320] : memref<16x640xf32, #tpu.memory_space<vmem>>, vector<16x32xf32>
    %c0_116 = arith.constant 0 : index
    %c320_117 = arith.constant 320 : index
    %561 = vector.load %arg2[%c0_116, %c320_117] : memref<1x640xf32, #tpu.memory_space<vmem>>, vector<1x32xf32>
    %cst_118 = arith.constant dense<0.000000e+00> : vector<8x32xf32>
    %562 = tpu.matmul %559, %560, %cst_118 {dimension_numbers = #tpu.dot_dimension_numbers<[1], [0], [0], [1], [0, 0, 1, 1], [], []>} : vector<8x16xf32>, vector<16x32xf32>, vector<8x32xf32> -> vector<8x32xf32>
    %563 = vector.broadcast %561 : vector<1x32xf32> to vector<8x32xf32>
    %564 = arith.addf %562, %563 : vector<8x32xf32>
    %565 = vector.extract_strided_slice %564 {offsets = [0, 16], sizes = [8, 16], strides = [1, 1]} : vector<8x32xf32> to vector<8x16xf32>
    %cst_119 = arith.constant 0.000000e+00 : f32
    %566 = vector.broadcast %cst_119 : f32 to vector<8x16xf32>
    %567 = arith.subf %566, %565 : vector<8x16xf32>
    %568 = math.exp %567 : vector<8x16xf32>
    %cst_120 = arith.constant 1.000000e+00 : f32
    %569 = vector.broadcast %cst_120 : f32 to vector<8x16xf32>
    %570 = arith.addf %569, %568 : vector<8x16xf32>
    %571 = tpu.reciprocal %570 {approx = true} : vector<8x16xf32> -> vector<8x16xf32>
    %572 = vector.extract_strided_slice %564 {offsets = [0, 0], sizes = [8, 16], strides = [1, 1]} : vector<8x32xf32> to vector<8x16xf32>
    %573 = arith.mulf %572, %571 : vector<8x16xf32>
    %574 = arith.addf %559, %573 : vector<8x16xf32>
    %cst_121 = arith.constant 0.707106769 : f32
    %575 = vector.broadcast %cst_121 : f32 to vector<8x16xf32>
    %576 = arith.mulf %574, %575 : vector<8x16xf32>
    %c0_122 = arith.constant 0 : index
    %c352 = arith.constant 352 : index
    %577 = vector.load %arg1[%c0_122, %c352] : memref<16x640xf32, #tpu.memory_space<vmem>>, vector<16x32xf32>
    %c0_123 = arith.constant 0 : index
    %c352_124 = arith.constant 352 : index
    %578 = vector.load %arg2[%c0_123, %c352_124] : memref<1x640xf32, #tpu.memory_space<vmem>>, vector<1x32xf32>
    %cst_125 = arith.constant dense<0.000000e+00> : vector<8x32xf32>
    %579 = tpu.matmul %576, %577, %cst_125 {dimension_numbers = #tpu.dot_dimension_numbers<[1], [0], [0], [1], [0, 0, 1, 1], [], []>} : vector<8x16xf32>, vector<16x32xf32>, vector<8x32xf32> -> vector<8x32xf32>
    %580 = vector.broadcast %578 : vector<1x32xf32> to vector<8x32xf32>
    %581 = arith.addf %579, %580 : vector<8x32xf32>
    %582 = vector.extract_strided_slice %581 {offsets = [0, 16], sizes = [8, 16], strides = [1, 1]} : vector<8x32xf32> to vector<8x16xf32>
    %cst_126 = arith.constant 0.000000e+00 : f32
    %583 = vector.broadcast %cst_126 : f32 to vector<8x16xf32>
    %584 = arith.subf %583, %582 : vector<8x16xf32>
    %585 = math.exp %584 : vector<8x16xf32>
    %cst_127 = arith.constant 1.000000e+00 : f32
    %586 = vector.broadcast %cst_127 : f32 to vector<8x16xf32>
    %587 = arith.addf %586, %585 : vector<8x16xf32>
    %588 = tpu.reciprocal %587 {approx = true} : vector<8x16xf32> -> vector<8x16xf32>
    %589 = vector.extract_strided_slice %581 {offsets = [0, 0], sizes = [8, 16], strides = [1, 1]} : vector<8x32xf32> to vector<8x16xf32>
    %590 = arith.mulf %589, %588 : vector<8x16xf32>
    %591 = arith.addf %576, %590 : vector<8x16xf32>
    %cst_128 = arith.constant 0.707106769 : f32
    %592 = vector.broadcast %cst_128 : f32 to vector<8x16xf32>
    %593 = arith.mulf %591, %592 : vector<8x16xf32>
    %cst_129 = arith.constant 0.000000e+00 : f32
    %594 = vector.broadcast %cst_129 : f32 to vector<8x16xf32>
    %595 = arith.maximumf %593, %594 : vector<8x16xf32>
    %596 = arith.addf %334, %595 : vector<8x16xf32>
    %c0_130 = arith.constant 0 : index
    %c512 = arith.constant 512 : index
    %597 = vector.load %arg1[%c0_130, %c512] : memref<16x640xf32, #tpu.memory_space<vmem>>, vector<16x128xf32>
    %cst_131 = arith.constant dense<0.000000e+00> : vector<8x128xf32>
    %598 = tpu.matmul %596, %597, %cst_131 {dimension_numbers = #tpu.dot_dimension_numbers<[1], [0], [0], [1], [0, 0, 1, 1], [], []>} : vector<8x16xf32>, vector<16x128xf32>, vector<8x128xf32> -> vector<8x128xf32>
    %c0_132 = arith.constant 0 : index
    %c512_133 = arith.constant 512 : index
    %599 = vector.load %arg2[%c0_132, %c512_133] : memref<1x640xf32, #tpu.memory_space<vmem>>, vector<1x128xf32>
    %600 = vector.broadcast %599 : vector<1x128xf32> to vector<8x128xf32>
    %601 = arith.addf %598, %600 : vector<8x128xf32>
    %c0_134 = arith.constant 0 : index
    %c0_135 = arith.constant 0 : index
    %602 = vector.load %arg3[%c0_134, %c0_135] : memref<8x128xf32, #tpu.memory_space<vmem>>, vector<8x128xf32>
    tpu.vector_store %arg3[%c0_134, %c0_135], %601 {strides = array<i32>} : memref<8x128xf32, #tpu.memory_space<vmem>>, vector<8x128xf32>,
    %c0_136 = arith.constant 0 : index
    %c0_137 = arith.constant 0 : index
    %603 = memref.load %arg4[%c0_136, %c0_137] : memref<1x1xf32, #tpu.memory_space<smem>>
    memref.store %527, %arg4[%c0_136, %c0_137] : memref<1x1xf32, #tpu.memory_space<smem>>
    return
  }
}

</mosaic_0001>

<bundles_post_ra>
// kernel: tpu_custom_call.1
= control target key start
LH: loop header
LB: loop body
LE: loop exit
PB: predicated region body
PF: predicated region fallthrough
CT: control target
= control target key end

     0   :  { %10 = vsyncpa [#allocation3], 0  ;;  %s1814_s0 = inlined_call_operand.hbm [shape: f32[8,16], index: 0, kind: input, shape index: {}]   ;;  %s1815_s1 = inlined_call_operand.hbm [shape: f32[16,640], index: 1, kind: input, shape index: {}]   ;;  %s1816_s2 = inlined_call_operand.hbm [shape: f32[1,640], index: 2, kind: input, shape index: {}]   ;;  %s1817_s3 = inlined_call_operand.hbm [shape: f32[8,128], index: 3, kind: output, shape index: {0}]   ;;  %s1818_s4 = inlined_call_operand.hbm [shape: f32[1,1], index: 4, kind: output, shape index: {1}]  }
   0x1   :  { %11 = vsyncpa [#allocation7], 0 }
   0x2   :  { %12 = vsyncpa [#allocation4], 0  ;;  %s29_s17 = sshll.u32 %s1815_s1, 4  ;;  %s30_s17 = int_to_ptr.hbm [resolvable:$true] %s29_s17 }
   0x3   :  { %13 = vsyncpa [#allocation5], 0  ;;  %s1496_s18 = smov [#allocation6]   ;;  %s19_s22 = sshll.u32 %s1814_s0, 4  ;;  %s20_s22 = int_to_ptr.hbm [resolvable:$true] %s19_s22 }
   0x4   :  { %s31_s19 = sshll.u32 %s1496_s18, 4  ;;  %s1497_s23 = smov 640   ;;  %s32_s19 = int_to_ptr.vmem [resolvable:$true] %s31_s19 }
   0x5   :  { %s1498_s24 = smov 40   ;;  %s1499_s25 = smov [#allocation2]  }
   0x6   :  { %37 = dma.hbm_to_vmem [thread:$0]  %s30_s17, 1280, %s32_s19, [#allocation7], %s1497_s23, %s1497_s23, %s1498_s24  }
   0x7   :  { %s21_s26 = sshll.u32 %s1499_s25, 4  ;;  %s43_s29 = sshll.u32 %s1816_s2, 4  ;;  %s22_s26 = int_to_ptr.vmem [resolvable:$true] %s21_s26  ;;  %s44_s29 = int_to_ptr.hbm [resolvable:$true] %s43_s29 }
   0x8   :  { %24 = dma.hbm_to_vmem [thread:$0]  %s20_s22, 128, %s22_s26, [#allocation3]  }
   0x9   :  { %s1500_s1 = smov [#allocation8]  }
   0xa   :  { %s45_s30 = sshll.u32 %s1500_s1, 4  ;;  %s46_s30 = int_to_ptr.vmem [resolvable:$true] %s45_s30 }
   0xb   :  { %48 = dma.hbm_to_vmem [thread:$0]  %s44_s29, 80, %s46_s30, [#allocation7]  }
   0xc   :  { %1488 = dma.done.wait [#allocation3], 128  }
   0xd   :  { %1489 = vsyncadd [#allocation3], 4294967168 }
   0xe   :  { %1490 = dma.done.wait [#allocation7], 1360  }
   0xf   :  { %1491 = vsyncadd [#allocation7], 4294965936  ;;  %v1559_v0 = vld [vmem:[#allocation8 + $0x3] ss:$0 sm:$0xff]  ;;  %v72_v1 = vld [vmem:[#allocation6 + $0x28] sm:$0xff]  ;;  %s1501_s0 = smov 112  }
  0x10   :  { %95 = vmatpush.msra.mxu0 %v72_v1  ;;  %67 = vrot.lane.b32.xlu0 %v1559_v0, %s1501_s0  ;;  %v71_v2 = vld [vmem:[#allocation6] sm:$0xff]  ;;  %v61_v3 = vld [vmem:[#allocation2] sm:$0xff]  ;;  %vm77_vm0 = vcmask 130048   ;;  %s1502_s2 = smov 96   ;;  %v1320_v8 = vld [vmem:[#allocation8] ss:$0 sm:$0xff] }
  0x11   :  { %v66_v4 = vmul.f32 %v1559_v0, %v61_v3  ;;  %v1236_v7 = vpack.i.bf16 %v71_v2, %v72_v1  ;;  %s1503_s5 = smov 64   ;;  %s1504_s6 = smov 32   ;;  %v1583_v59 = vld [vmem:[#allocation6 + $0x40] sm:$0xff]  ;;  %v1586_v60 = vld [vmem:[#allocation6 + $0x18] sm:$0xff]  ;;  %v1505_v3 = vmov 2  }
  0x12   :  { %96 = vmatpush.msra.mxu0 %v71_v2  ;;  %v1282_v61 = vpack.i.bf16 %v1586_v60, %v1583_v59  ;;  %1253 = vset.pattern.permute.xlu2 %v1505_v3  ;;  %s1522_s7 = smov 80   ;;  %s1135_s15 = sshll.u32 %s1818_s4, 4  ;;  %s1136_s15 = int_to_ptr.hbm [resolvable:$true] %s1135_s15 }
  0x13   :  { %s1523_s16 = smov [#allocation10]   ;;  %s1524_s17 = smov [#allocation9]  }
  0x14   :  { %267 = vmatpush.msrb.mxu0 %v1583_v59  ;;  %s1124_s18 = sshll.u32 %s1524_s17, 4  ;;  %s1126_s21 = sshll.u32 %s1817_s3, 4  ;;  %s1125_s18 = int_to_ptr.vmem [resolvable:$true] %s1124_s18  ;;  %s1127_s21 = int_to_ptr.hbm [resolvable:$true] %s1126_s21 }
  0x16   :  { %268 = vmatpush.msrb.mxu0 %v1586_v60 }
  0x18   :  { %1237 = vrot.lane.b32.xlu0 %v1236_v7, %s1502_s2 }
  0x20   :  { %163 = vrot.lane.b32.xlu0 %v1320_v8, %s1503_s5 }
  0x28   :  { %207 = vrot.lane.b32.xlu0 %v1320_v8, %s1504_s6 }
  0x82   :  { %v68_v5 = vpop.permute.xlu0 %67 }
  0x83   :  { %v1564_v6 = vadd.f32 %v68_v5, %v66_v4  ;;  %v1506_v4 = vmov 1   ;;  %v1507_v5 = vmov 0  }
  0x84   :  { %1252 = vset.pattern.permute.xlu1 %v1506_v4  ;;  %1251 = vset.pattern.permute.xlu0 %v1507_v5 }
  0x85   :  { %1152 = vmatmul.msk.f32.vlgmr.msra.gmra.mxu0 %vm77_vm0, %v1564_v6 }
  0x8a   :  { %v1238_v16 = vpop.permute.xlu0 %1237 }
  0x8b   :  { %v1239_v17 = vunpack.i.l.bf16 %v1238_v16  ;;  %v1240_v18 = vunpack.i.h.bf16 %v1238_v16  ;;  %v1514_v16 = vmov 9  }
  0x8d   :  { %139 = vmatpush.msra.mxu1 %v1239_v17  ;;  %v1515_v17 = vmov 8  }
  0x8f   :  { %140 = vmatpush.msra.mxu1 %v1240_v18  ;;  %v1516_v18 = vmov 15  }
  0x92   :  { %v164_v36 = vpop.permute.xlu0 %163 }
  0x9a   :  { %v208_v51 = vpop.permute.xlu0 %207 }
 0x102   :  { %v98_v9 = vpop.f32.mrf.mxu0 }
 0x103   :  { %v99_v10 = vadd.f32 %v1320_v8, %v98_v9 }
 0x105   :  { %v101_v11 = vsub.f32 0.0, %v99_v10 }
 0x107   :  { %v102_v12 = vmul.f32 1.442695, %v101_v11  ;;  %v1509_v11 = vmov 3  }
 0x109   :  { %1324 = vpow2.f32 %v102_v12  ;;  %v1510_v12 = vmov 5  }
 0x10f   :  { %v1325_v13 = vpop.eup %1324 }
 0x110   :  { %v104_v14 = vadd.f32 1.0, %v1325_v13  ;;  %v1511_v13 = vmov 7  }
 0x112   :  { %1326 = vrcp.f32 %v104_v14  ;;  %v1512_v14 = vmov 6  }
 0x118   :  { %v1327_v15 = vpop.eup %1326 }
 0x119   :  { %107 = vrot.lane.b32.xlu1 %v1327_v15, %s1501_s0  ;;  %v1513_v15 = vmov 10  }
 0x121   :  { %119 = vrot.lane.b32.xlu1 %v1320_v8, %s1502_s2 }
 0x18b   :  { %v108_v19 = vpop.permute.xlu1 %107 }
 0x18c   :  { %v110_v20 = vmul.f32 %v108_v19, %v99_v10  ;;  %v1508_v10 = vmov 4   ;;  %v1517_v19 = vmov 12  }
 0x18e   :  { %1153 = vmatmul.msk.f32.vlgmr.msra.gmra.mxu1 %vm77_vm0, %v110_v20 }
 0x193   :  { %v120_v21 = vpop.permute.xlu1 %119 }
 0x20b   :  { %v142_v22 = vpop.f32.mrf.mxu1 }
 0x20c   :  { %v143_v23 = vadd.f32 %v142_v22, %v120_v21  ;;  %v1519_v21 = vmov 14   ;;  %v1520_v22 = vmov 13  }
 0x20e   :  { %v145_v24 = vsub.f32 0.0, %v143_v23 }
 0x210   :  { %v146_v25 = vmul.f32 1.442695, %v145_v24 }
 0x212   :  { %1328 = vpow2.f32 %v146_v25 }
 0x218   :  { %v1329_v26 = vpop.eup %1328 }
 0x219   :  { %v148_v27 = vadd.f32 1.0, %v1329_v26 }
 0x21b   :  { %1330 = vrcp.f32 %v148_v27 }
 0x221   :  { %v1331_v28 = vpop.eup %1330 }
 0x222   :  { %151 = vrot.lane.b32.xlu2 %v1331_v28, %s1501_s0 }
 0x22a   :  { %1242 = vrot.lane.b32.xlu2 %v1236_v7, %s1503_s5 }
 0x232   :  { %1247 = vrot.lane.b32.xlu2 %v1236_v7, %s1504_s6 }
 0x23a   :  { %247 = vrot.lane.b32.xlu2 %v1559_v0, %s1502_s2 }
 0x27c   :  { %v152_v29 = vpop.permute.xlu2 %151 }
 0x27d   :  { %v154_v30 = vmul.f32 %v152_v29, %v143_v23 }
 0x27f   :  { %v155_v31 = vadd.f32 %v154_v30, %v110_v20  ;;  %v1518_v20 = vmov 11  }
 0x281   :  { %v156_v35 = vmul.f32 0.70710677, %v155_v31 }
 0x284   :  { %v1243_v32 = vpop.permute.xlu2 %1242 }
 0x285   :  { %v1244_v33 = vunpack.i.l.bf16 %v1243_v32  ;;  %v1245_v34 = vunpack.i.h.bf16 %v1243_v32 }
 0x287   :  { %183 = vmatpush.msra.mxu2 %v1244_v33 }
 0x289   :  { %184 = vmatpush.msra.mxu2 %v1245_v34 }
 0x28a   :  { %1154 = vmatmul.msk.f32.vlgmr.msra.gmra.mxu2 %vm77_vm0, %v156_v35 }
 0x28c   :  { %v1248_v44 = vpop.permute.xlu2 %1247 }
 0x28d   :  { %v1249_v45 = vunpack.i.l.bf16 %v1248_v44  ;;  %v1250_v46 = vunpack.i.h.bf16 %v1248_v44 }
 0x28f   :  { %227 = vmatpush.msra.mxu3 %v1249_v45 }
 0x291   :  { %228 = vmatpush.msra.mxu3 %v1250_v46 }
 0x294   :  { %v248_v7 = vpop.permute.xlu2 %247 }
 0x30d   :  { %v186_v37 = vpop.f32.mrf.mxu2 }
 0x30e   :  { %v187_v38 = vadd.f32 %v186_v37, %v164_v36 }
 0x310   :  { %v189_v39 = vsub.f32 0.0, %v187_v38 }
 0x312   :  { %v190_v40 = vmul.f32 1.442695, %v189_v39 }
 0x314   :  { %1332 = vpow2.f32 %v190_v40 }
 0x31a   :  { %v1333_v41 = vpop.eup %1332 }
 0x31b   :  { %v192_v42 = vadd.f32 1.0, %v1333_v41 }
 0x31d   :  { %1334 = vrcp.f32 %v192_v42 }
 0x323   :  { %v1335_v43 = vpop.eup %1334 }
 0x324   :  { %195 = vrot.lane.b32.xlu1 %v1335_v43, %s1501_s0 }
 0x396   :  { %v196_v47 = vpop.permute.xlu1 %195 }
 0x397   :  { %v198_v48 = vmul.f32 %v196_v47, %v187_v38 }
 0x399   :  { %v199_v49 = vadd.f32 %v198_v48, %v156_v35  ;;  %v1521_v35 = vmov 0.0  }
 0x39b   :  { %v200_v50 = vmul.f32 0.70710677, %v199_v49 }
 0x39d   :  { %1155 = vmatmul.msk.f32.vlgmr.msra.gmra.mxu3 %vm77_vm0, %v200_v50 }
 0x420   :  { %v230_v52 = vpop.f32.mrf.mxu3 }
 0x421   :  { %v231_v53 = vadd.f32 %v230_v52, %v208_v51 }
 0x423   :  { %v233_v54 = vsub.f32 0.0, %v231_v53 }
 0x425   :  { %v234_v55 = vmul.f32 1.442695, %v233_v54 }
 0x427   :  { %1336 = vpow2.f32 %v234_v55 }
 0x42d   :  { %v1337_v56 = vpop.eup %1336 }
 0x42e   :  { %v236_v57 = vadd.f32 1.0, %v1337_v56 }
 0x430   :  { %1338 = vrcp.f32 %v236_v57 }
 0x436   :  { %v1339_v58 = vpop.eup %1338 }
 0x437   :  { %239 = vrot.lane.b32.xlu1 %v1339_v58, %s1501_s0 }
 0x4a9   :  { %v240_v62 = vpop.permute.xlu1 %239 }
 0x4aa   :  { %v242_v63 = vmul.f32 %v240_v62, %v231_v53 }
 0x4ac   :  { %v243_v1 = vadd.f32 %v242_v63, %v200_v50 }
 0x4ae   :  { %v244_v2 = vmul.f32 0.70710677, %v243_v1 }
 0x4b0   :  { %1156 = vmatmul.msk.f32.vlgmr.msrb.gmra.mxu0 %vm77_vm0, %v244_v2 }
 0x52d   :  { %v270_v8 = vpop.f32.mrf.mxu0 }
 0x52e   :  { %v1592_v9 = vadd.f32 %v270_v8, %v248_v7 }
 0x530   :  { %295 = vperm.xlu2 %1253, %v1592_v9   ;;  %285 = vperm.xlu1 %1252, %v1592_v9  }
 0x531   :  { %275 = vperm.xlu0 %1251, %v1592_v9  }
 0x538   :  { %1255 = vset.pattern.permute.xlu2 %v1508_v10  ;;  %1254 = vset.pattern.permute.xlu1 %v1509_v11 }
 0x539   :  { %1256 = vset.pattern.permute.xlu0 %v1510_v12  ;;  %315 = vperm.xlu2 %1255, %v1592_v9  }
 0x53a   :  { %305 = vperm.xlu1 %1254, %v1592_v9   ;;  %325 = vperm.xlu0 %1256, %v1592_v9  }
 0x541   :  { %1258 = vset.pattern.permute.xlu2 %v1511_v13 }
 0x542   :  { %1257 = vset.pattern.permute.xlu1 %v1512_v14  ;;  %1261 = vset.pattern.permute.xlu0 %v1513_v15 }
 0x543   :  { %345 = vperm.xlu2 %1258, %v1592_v9   ;;  %335 = vperm.xlu1 %1257, %v1592_v9  }
 0x544   :  { %375 = vperm.xlu0 %1261, %v1592_v9  }
 0x54b   :  { %1260 = vset.pattern.permute.xlu2 %v1514_v16  ;;  %1259 = vset.pattern.permute.xlu1 %v1515_v17 }
 0x54c   :  { %1266 = vset.pattern.permute.xlu0 %v1516_v18  ;;  %365 = vperm.xlu2 %1260, %v1592_v9  }
 0x54d   :  { %355 = vperm.xlu1 %1259, %v1592_v9   ;;  %425 = vperm.xlu0 %1266, %v1592_v9  }
 0x554   :  { %1263 = vset.pattern.permute.xlu2 %v1517_v19 }
 0x555   :  { %1262 = vset.pattern.permute.xlu1 %v1518_v20  ;;  %395 = vperm.xlu2 %1263, %v1592_v9  }
 0x556   :  { %385 = vperm.xlu1 %1262, %v1592_v9   ;;  %1289 = vset.pattern.permute.xlu0 %v1505_v3 }
 0x55d   :  { %1265 = vset.pattern.permute.xlu2 %v1519_v21 }
 0x55e   :  { %1264 = vset.pattern.permute.xlu1 %v1520_v22  ;;  %415 = vperm.xlu2 %1265, %v1592_v9  }
 0x55f   :  { %405 = vperm.xlu1 %1264, %v1592_v9  }
 0x566   :  { %1287 = vset.pattern.permute.xlu2 %v1507_v5 }
 0x567   :  { %1288 = vset.pattern.permute.xlu1 %v1506_v4 }
 0x58a   :  { %v296_v23 = vpop.permute.xlu2 %295 }
 0x58b   :  { %vm298_vm1 = vcmp.ge.f32.partialorder %v296_v23, %v1592_v9 }
 0x58c   :  { %v1159_v36 = vsel %vm298_vm1, 1.0, %v1521_v35 }
 0x58d   :  { %v302_v41 = vmul.f32 %v1159_v36, %v296_v23 }
 0x593   :  { %v316_v24 = vpop.permute.xlu2 %315 }
 0x594   :  { %vm318_vm2 = vcmp.ge.f32.partialorder %v316_v24, %v1592_v9 }
 0x595   :  { %v1161_v37 = vsel %vm318_vm2, 1.0, %v1521_v35 }
 0x596   :  { %v322_v43 = vmul.f32 %v1161_v37, %v316_v24 }
 0x59d   :  { %v346_v26 = vpop.permute.xlu2 %345 }
 0x59e   :  { %vm348_vm3 = vcmp.ge.f32.partialorder %v346_v26, %v1592_v9 }
 0x59f   :  { %v1164_v38 = vsel %vm348_vm3, 1.0, %v1521_v35 }
 0x5a0   :  { %v352_v44 = vmul.f32 %v1164_v38, %v346_v26 }
 0x5a2   :  { %v286_v25 = vpop.permute.xlu1 %285 }
 0x5a3   :  { %v276_v28 = vpop.permute.xlu0 %275  ;;  %vm288_vm4 = vcmp.ge.f32.partialorder %v286_v25, %v1592_v9 }
 0x5a4   :  { %vm278_vm6 = vcmp.ge.f32.partialorder %v276_v28, %v1592_v9  ;;  %v1158_v39 = vsel %vm288_vm4, 1.0, %v1521_v35 }
 0x5a5   :  { %v1157_v42 = vsel %vm278_vm6, 1.0, %v1521_v35  ;;  %v292_v45 = vmul.f32 %v1158_v39, %v286_v25 }
 0x5a6   :  { %v366_v30 = vpop.permute.xlu2 %365  ;;  %v282_v50 = vmul.f32 %v1157_v42, %v276_v28  ;;  %v321_v51 = vadd.f32 %v1161_v37, %v1157_v42 }
 0x5a7   :  { %vm368_vm10 = vcmp.ge.f32.partialorder %v366_v30, %v1592_v9 }
 0x5a8   :  { %v1166_v58 = vsel %vm368_vm10, 1.0, %v1521_v35  ;;  %v323_v23 = vadd.f32 %v322_v43, %v282_v50 }
 0x5a9   :  { %v372_v24 = vmul.f32 %v1166_v58, %v366_v30 }
 0x5ac   :  { %v306_v27 = vpop.permute.xlu1 %305  ;;  %v326_v31 = vpop.permute.xlu0 %325 }
 0x5ad   :  { %vm328_vm5 = vcmp.ge.f32.partialorder %v326_v31, %v1592_v9  ;;  %vm308_vm8 = vcmp.ge.f32.partialorder %v306_v27, %v1592_v9 }
 0x5ae   :  { %v1162_v40 = vsel %vm328_vm5, 1.0, %v1521_v35  ;;  %v1160_v48 = vsel %vm308_vm8, 1.0, %v1521_v35 }
 0x5af   :  { %v396_v33 = vpop.permute.xlu2 %395  ;;  %v332_v49 = vmul.f32 %v1162_v40, %v326_v31  ;;  %v312_v62 = vmul.f32 %v1160_v48, %v306_v27  ;;  %v351_v63 = vadd.f32 %v1164_v38, %v1160_v48  ;;  %v331_v1 = vadd.f32 %v1162_v40, %v1158_v39 }
 0x5b0   :  { %vm398_vm12 = vcmp.ge.f32.partialorder %v396_v33, %v1592_v9 }
 0x5b1   :  { %v333_v2 = vadd.f32 %v332_v49, %v292_v45  ;;  %v1169_v3 = vsel %vm398_vm12, 1.0, %v1521_v35  ;;  %v353_v28 = vadd.f32 %v352_v44, %v312_v62  ;;  %v371_v31 = vadd.f32 %v1166_v58, %v331_v1 }
 0x5b3   :  { %v373_v45 = vadd.f32 %v372_v24, %v333_v2 }
 0x5b5   :  { %v336_v29 = vpop.permute.xlu1 %335 }
 0x5b6   :  { %v376_v34 = vpop.permute.xlu0 %375  ;;  %vm338_vm7 = vcmp.ge.f32.partialorder %v336_v29, %v1592_v9 }
 0x5b7   :  { %v1163_v46 = vsel %vm338_vm7, 1.0, %v1521_v35  ;;  %vm378_vm13 = vcmp.ge.f32.partialorder %v376_v34, %v1592_v9 }
 0x5b8   :  { %v416_v52 = vpop.permute.xlu2 %415  ;;  %v341_v54 = vadd.f32 %v1163_v46, %v1159_v36  ;;  %v342_v55 = vmul.f32 %v1163_v46, %v336_v29  ;;  %v1167_v5 = vsel %vm378_vm13, 1.0, %v1521_v35  ;;  %v402_v36 = vmul.f32 %v1169_v3, %v396_v33 }
 0x5b9   :  { %vm418_vm14 = vcmp.ge.f32.partialorder %v416_v52, %v1592_v9  ;;  %v382_v37 = vmul.f32 %v1167_v5, %v376_v34 }
 0x5ba   :  { %v343_v25 = vadd.f32 %v342_v55, %v302_v41  ;;  %v381_v26 = vadd.f32 %v1167_v5, %v341_v54  ;;  %v1171_v27 = vsel %vm418_vm14, 1.0, %v1521_v35  ;;  %v488_v5 = vld [vmem:[#allocation6 + $0x8] sm:$0xff] }
 0x5bb   :  { %v422_v41 = vmul.f32 %v1171_v27, %v416_v52 }
 0x5bc   :  { %v383_v43 = vadd.f32 %v382_v37, %v343_v25  ;;  %v421_v30 = vadd.f32 %v1171_v27, %v381_v26 }
 0x5be   :  { %v423_v54 = vadd.f32 %v422_v41, %v383_v43 }
 0x5bf   :  { %v356_v32 = vpop.permute.xlu1 %355  ;;  %v426_v56 = vpop.permute.xlu0 %425 }
 0x5c0   :  { %vm358_vm9 = vcmp.ge.f32.partialorder %v356_v32, %v1592_v9  ;;  %vm428_vm15 = vcmp.ge.f32.partialorder %v426_v56, %v1592_v9 }
 0x5c1   :  { %v1165_v53 = vsel %vm358_vm9, 1.0, %v1521_v35 }
 0x5c2   :  { %v362_v4 = vmul.f32 %v1165_v53, %v356_v32  ;;  %v361_v29 = vadd.f32 %v1165_v53, %v321_v51  ;;  %v1172_v32 = vsel %vm428_vm15, 1.0, %v1521_v35 }
 0x5c4   :  { %v363_v38 = vadd.f32 %v362_v4, %v323_v23  ;;  %v401_v46 = vadd.f32 %v1169_v3, %v361_v29  ;;  %v489_v4 = vld [vmem:[#allocation6 + $0x30] sm:$0xff] }
 0x5c5   :  { %511 = vmatpush.msrb.mxu1 %v489_v4 }
 0x5c6   :  { %v403_v33 = vadd.f32 %v402_v36, %v363_v38 }
 0x5c7   :  { %512 = vmatpush.msrb.mxu1 %v488_v5 }
 0x5c8   :  { %v386_v47 = vpop.permute.xlu1 %385 }
 0x5c9   :  { %vm388_vm11 = vcmp.ge.f32.partialorder %v386_v47, %v1592_v9 }
 0x5ca   :  { %v1168_v57 = vsel %vm388_vm11, 1.0, %v1521_v35 }
 0x5cb   :  { %v391_v7 = vadd.f32 %v1168_v57, %v351_v63  ;;  %v392_v8 = vmul.f32 %v1168_v57, %v386_v47  ;;  %v432_v47 = vmul.f32 %v1172_v32, %v426_v56 }
 0x5cd   :  { %v393_v40 = vadd.f32 %v392_v8, %v353_v28  ;;  %v431_v42 = vadd.f32 %v1172_v32, %v391_v7  ;;  %v1660_v7 = vld [vmem:[#allocation8 + $0x1] ss:$0 sm:$0xff] }
 0x5cf   :  { %v433_v34 = vadd.f32 %v432_v47, %v393_v40  ;;  %v435_v50 = vadd.f32 %v431_v42, %v421_v30  ;;  %v1267_v40 = vpack.i.bf16 %v488_v5, %v489_v4 }
 0x5d1   :  { %v406_v39 = vpop.permute.xlu1 %405  ;;  %v438_v58 = vadd.f32 %v433_v34, %v423_v54  ;;  %1268 = vrot.lane.b32.xlu0 %v1267_v40, %s1502_s2 }
 0x5d2   :  { %vm408_vm1 = vcmp.ge.f32.partialorder %v406_v39, %v1592_v9 }
 0x5d3   :  { %v1170_v44 = vsel %vm408_vm1, 1.0, %v1521_v35 }
 0x5d4   :  { %v411_v48 = vadd.f32 %v1170_v44, %v371_v31  ;;  %v412_v49 = vmul.f32 %v1170_v44, %v406_v39 }
 0x5d6   :  { %v413_v51 = vadd.f32 %v412_v49, %v373_v45  ;;  %v434_v53 = vadd.f32 %v411_v48, %v401_v46 }
 0x5d8   :  { %v437_v55 = vadd.f32 %v413_v51, %v403_v33  ;;  %v436_v57 = vadd.f32 %v435_v50, %v434_v53 }
 0x5da   :  { %v440_v62 = vmul.f32 %v436_v57, %v1592_v9  ;;  %v439_v63 = vadd.f32 %v438_v58, %v437_v55 }
 0x5dc   :  { %v441_v1 = vadd.f32 1.0, %v440_v62 }
 0x5de   :  { %vm442_vm2 = vcmp.gt.f32.partialorder %v441_v1, %v439_v63 }
 0x5df   :  { %v1173_v52 = vsel %vm442_vm2, 1.0, %v1521_v35 }
 0x5e0   :  { %v445_v56 = vsel %vm77_vm0, %v1173_v52, 0.0  ;;  %v448_v2 = vmul.f32 %v1173_v52, %v1592_v9 }
 0x5e1   :  { %446 = vadd.xlane.f32.xlu1 %v445_v56 }
 0x5e2   :  { %v449_v3 = vsel %vm77_vm0, %v448_v2, 0.0 }
 0x5e3   :  { %450 = vadd.xlane.f32.xlu2 %v449_v3 }
 0x5fa   :  { %579 = vrot.lane.b32.xlu1 %v1660_v7, %s1503_s5 }
 0x5fb   :  { %1273 = vrot.lane.b32.xlu2 %v1267_v40, %s1503_s5 }
 0x602   :  { %1283 = vrot.lane.b32.xlu1 %v1282_v61, %s1501_s0 }
 0x643   :  { %v1269_v46 = vpop.permute.xlu0 %1268 }
 0x644   :  { %v1270_v47 = vunpack.i.l.bf16 %v1269_v46  ;;  %v1271_v48 = vunpack.i.h.bf16 %v1269_v46 }
 0x646   :  { %555 = vmatpush.msrb.mxu2 %v1270_v47 }
 0x648   :  { %556 = vmatpush.msrb.mxu2 %v1271_v48 }
 0x654   :  { %v447_v8 = vpop.xlane.xlu1 %446 }
 0x655   :  { %1340 = vrcp.f32 %v447_v8  ;;  %v464_v26 = vand.u32 2147483648, %v447_v8  ;;  %v462_v27 = vand.u32 2147483647, %v447_v8  ;;  %vm458_vm4 = vweird.f32 %v447_v8 }
 0x656   :  { %v451_v29 = vpop.xlane.xlu2 %450 }
 0x657   :  { %v465_v36 = vor.u32 1.1754944e-38, %v464_v26  ;;  %v1174_v37 = vadd.f32 -1.0, %v451_v29  ;;  %vm463_vm6 = vcmp.eq.f32.partialorder %v462_v27, 8.507059e+37 }
 0x65b   :  { %v1341_v23 = vpop.eup %1340 }
 0x65c   :  { %v454_v24 = vmul.f32 %v1341_v23, %v447_v8  ;;  %vm459_vm3 = vweird.f32 %v1341_v23 }
 0x65d   :  { %vm460_vm5 = vmor %vm458_vm4, %vm459_vm3 }
 0x65e   :  { %v455_v25 = vsub.f32 1.0, %v454_v24  ;;  %v1274_v62 = vpop.permute.xlu2 %1273 }
 0x65f   :  { %v1275_v63 = vunpack.i.l.bf16 %v1274_v62  ;;  %v1276_v1 = vunpack.i.h.bf16 %v1274_v62 }
 0x660   :  { %v456_v28 = vmul.f32 %v1341_v23, %v455_v25 }
 0x661   :  { %599 = vmatpush.msrb.mxu3 %v1275_v63 }
 0x662   :  { %v457_v31 = vadd.f32 %v1341_v23, %v456_v28 }
 0x663   :  { %600 = vmatpush.msrb.mxu3 %v1276_v1 }
 0x664   :  { %v461_v38 = vsel %vm460_vm5, %v1341_v23, %v457_v31 }
 0x665   :  { %v466_v32 = vsel %vm463_vm6, %v465_v36, %v461_v38 }
 0x666   :  { %v467_v39 = vmul.f32 %v1174_v37, %v466_v32 }
 0x668   :  { %v468_v59 = vsub.f32 %v1592_v9, %v467_v39 }
 0x66a   :  { %v1669_v60 = vmax.f32 %v468_v59, 0.0 }
 0x66c   :  { %v487_v61 = vmul.f32 %v1669_v60, %v1564_v6  ;;  %v580_v4 = vpop.permute.xlu1 %579 }
 0x66e   :  { %1175 = vmatmul.msk.f32.vlgmr.msrb.gmra.mxu1 %vm77_vm0, %v487_v61 }
 0x674   :  { %v1284_v39 = vpop.permute.xlu1 %1283 }
 0x675   :  { %v1286_v59 = vunpack.i.h.bf16 %v1284_v39  ;;  %v1285_v61 = vunpack.i.l.bf16 %v1284_v39 }
 0x677   :  { %691 = vmatpush.msra.mxu1 %v1285_v61 }
 0x679   :  { %692 = vmatpush.msra.mxu1 %v1286_v59 }
 0x6eb   :  { %v514_v42 = vpop.f32.mrf.mxu1 }
 0x6ec   :  { %v515_v45 = vadd.f32 %v1660_v7, %v514_v42 }
 0x6ee   :  { %v517_v43 = vsub.f32 0.0, %v515_v45 }
 0x6f0   :  { %v518_v30 = vmul.f32 1.442695, %v517_v43 }
 0x6f2   :  { %1342 = vpow2.f32 %v518_v30 }
 0x6f8   :  { %v1343_v41 = vpop.eup %1342 }
 0x6f9   :  { %v520_v44 = vadd.f32 1.0, %v1343_v41 }
 0x6fb   :  { %1344 = vrcp.f32 %v520_v44 }
 0x701   :  { %v1345_v9 = vpop.eup %1344 }
 0x702   :  { %523 = vrot.lane.b32.xlu0 %v1345_v9, %s1501_s0 }
 0x70a   :  { %535 = vrot.lane.b32.xlu0 %v1660_v7, %s1502_s2 }
 0x774   :  { %v524_v49 = vpop.permute.xlu0 %523 }
 0x775   :  { %v526_v33 = vmul.f32 %v524_v49, %v515_v45 }
 0x777   :  { %1176 = vmatmul.msk.f32.vlgmr.msrb.gmra.mxu2 %vm77_vm0, %v526_v33 }
 0x77c   :  { %v536_v34 = vpop.permute.xlu0 %535 }
 0x7fa   :  { %v558_v50 = vpop.f32.mrf.mxu2 }
 0x7fb   :  { %v559_v51 = vadd.f32 %v558_v50, %v536_v34 }
 0x7fd   :  { %v561_v53 = vsub.f32 0.0, %v559_v51 }
 0x7ff   :  { %v562_v54 = vmul.f32 1.442695, %v561_v53  ;;  %v1741_v53 = vld [vmem:[#allocation6 + $0x10] sm:$0xff] }
 0x801   :  { %1346 = vpow2.f32 %v562_v54 }
 0x807   :  { %v1347_v55 = vpop.eup %1346 }
 0x808   :  { %v564_v57 = vadd.f32 1.0, %v1347_v55 }
 0x80a   :  { %1348 = vrcp.f32 %v564_v57 }
 0x810   :  { %v1349_v58 = vpop.eup %1348 }
 0x811   :  { %567 = vrot.lane.b32.xlu0 %v1349_v58, %s1501_s0 }
 0x883   :  { %v568_v52 = vpop.permute.xlu0 %567 }
 0x884   :  { %v570_v56 = vmul.f32 %v568_v52, %v559_v51 }
 0x886   :  { %v571_v2 = vadd.f32 %v570_v56, %v526_v33 }
 0x888   :  { %v572_v3 = vmul.f32 0.70710677, %v571_v2 }
 0x88a   :  { %1177 = vmatmul.msk.f32.vlgmr.msrb.gmra.mxu3 %vm77_vm0, %v572_v3 }
 0x90d   :  { %v602_v5 = vpop.f32.mrf.mxu3 }
 0x90e   :  { %v603_v8 = vadd.f32 %v602_v5, %v580_v4 }
 0x910   :  { %v605_v23 = vsub.f32 0.0, %v603_v8 }
 0x912   :  { %v606_v24 = vmul.f32 1.442695, %v605_v23 }
 0x914   :  { %1350 = vpow2.f32 %v606_v24 }
 0x91a   :  { %v1351_v25 = vpop.eup %1350 }
 0x91b   :  { %v608_v26 = vadd.f32 1.0, %v1351_v25 }
 0x91d   :  { %1352 = vrcp.f32 %v608_v26 }
 0x923   :  { %v1353_v28 = vpop.eup %1352 }
 0x924   :  { %611 = vrot.lane.b32.xlu0 %v1353_v28, %s1501_s0 }
 0x92c   :  { %1278 = vrot.lane.b32.xlu0 %v1267_v40, %s1504_s6 }
 0x934   :  { %623 = vrot.lane.b32.xlu0 %v1660_v7, %s1504_s6 }
 0x93c   :  { %671 = vrot.lane.b32.xlu0 %v1559_v0, %s1522_s7 }
 0x996   :  { %v612_v27 = vpop.permute.xlu0 %611 }
 0x997   :  { %v614_v29 = vmul.f32 %v612_v27, %v603_v8 }
 0x999   :  { %v615_v31 = vadd.f32 %v614_v29, %v572_v3 }
 0x99b   :  { %v616_v32 = vmul.f32 0.70710677, %v615_v31 }
 0x99e   :  { %v1279_v36 = vpop.permute.xlu0 %1278 }
 0x99f   :  { %v1280_v37 = vunpack.i.l.bf16 %v1279_v36  ;;  %v1281_v38 = vunpack.i.h.bf16 %v1279_v36 }
 0x9a1   :  { %643 = vmatpush.msra.mxu0 %v1280_v37 }
 0x9a3   :  { %644 = vmatpush.msra.mxu0 %v1281_v38 }
 0x9a4   :  { %1178 = vmatmul.msk.f32.vlgmr.msra.gmra.mxu0 %vm77_vm0, %v616_v32 }
 0x9a6   :  { %v624_v7 = vpop.permute.xlu0 %623 }
 0x9ae   :  { %v672_v0 = vpop.permute.xlu0 %671 }
 0xa21   :  { %v646_v40 = vpop.f32.mrf.mxu0 }
 0xa22   :  { %v647_v42 = vadd.f32 %v646_v40, %v624_v7 }
 0xa24   :  { %v649_v45 = vsub.f32 0.0, %v647_v42 }
 0xa26   :  { %v650_v43 = vmul.f32 1.442695, %v649_v45 }
 0xa28   :  { %1354 = vpow2.f32 %v650_v43 }
 0xa2e   :  { %v1355_v30 = vpop.eup %1354 }
 0xa2f   :  { %v652_v41 = vadd.f32 1.0, %v1355_v30 }
 0xa31   :  { %1356 = vrcp.f32 %v652_v41 }
 0xa37   :  { %v1357_v44 = vpop.eup %1356 }
 0xa38   :  { %655 = vrot.lane.b32.xlu2 %v1357_v44, %s1501_s0 }
 0xa92   :  { %v656_v9 = vpop.permute.xlu2 %655 }
 0xa93   :  { %v658_v46 = vmul.f32 %v656_v9, %v647_v42 }
 0xa95   :  { %v659_v47 = vadd.f32 %v658_v46, %v616_v32 }
 0xa97   :  { %v1690_v48 = vmul.f32 0.70710677, %v659_v47 }
 0xa99   :  { %1179 = vmatmul.msk.f32.vlgmr.msra.gmra.mxu1 %vm77_vm0, %v1690_v48 }
 0xb16   :  { %v694_v49 = vpop.f32.mrf.mxu1 }
 0xb17   :  { %v1694_v33 = vadd.f32 %v694_v49, %v672_v0 }
 0xb19   :  { %719 = vperm.xlu0 %1289, %v1694_v33   ;;  %709 = vperm.xlu1 %1288, %v1694_v33  }
 0xb1a   :  { %699 = vperm.xlu2 %1287, %v1694_v33  }
 0xb21   :  { %1294 = vset.pattern.permute.xlu0 %v1511_v13  ;;  %1291 = vset.pattern.permute.xlu1 %v1508_v10 }
 0xb22   :  { %1290 = vset.pattern.permute.xlu2 %v1509_v11  ;;  %769 = vperm.xlu0 %1294, %v1694_v33  }
 0xb23   :  { %739 = vperm.xlu1 %1291, %v1694_v33   ;;  %729 = vperm.xlu2 %1290, %v1694_v33  }
 0xb2a   :  { %1299 = vset.pattern.permute.xlu0 %v1517_v19 }
 0xb2b   :  { %1293 = vset.pattern.permute.xlu1 %v1512_v14  ;;  %1292 = vset.pattern.permute.xlu2 %v1510_v12 }
 0xb2c   :  { %819 = vperm.xlu0 %1299, %v1694_v33   ;;  %759 = vperm.xlu1 %1293, %v1694_v33  }
 0xb2d   :  { %749 = vperm.xlu2 %1292, %v1694_v33  }
 0xb34   :  { %1296 = vset.pattern.permute.xlu1 %v1514_v16  ;;  %1318 = vset.pattern.permute.xlu0 %v1516_v18 }
 0xb35   :  { %1295 = vset.pattern.permute.xlu2 %v1515_v17  ;;  %789 = vperm.xlu1 %1296, %v1694_v33  }
 0xb36   :  { %779 = vperm.xlu2 %1295, %v1694_v33  }
 0xb3d   :  { %1298 = vset.pattern.permute.xlu1 %v1518_v20 }
 0xb3e   :  { %1297 = vset.pattern.permute.xlu2 %v1513_v15  ;;  %809 = vperm.xlu1 %1298, %v1694_v33  }
 0xb3f   :  { %799 = vperm.xlu2 %1297, %v1694_v33  }
 0xb46   :  { %1301 = vset.pattern.permute.xlu1 %v1519_v21 }
 0xb47   :  { %1300 = vset.pattern.permute.xlu2 %v1520_v22  ;;  %839 = vperm.xlu1 %1301, %v1694_v33  }
 0xb48   :  { %829 = vperm.xlu2 %1300, %v1694_v33  }
 0xb50   :  { %1302 = vset.pattern.permute.xlu2 %v1516_v18  ;;  %v1732_v18 = vld [vmem:[#allocation6 + $0x38] sm:$0xff] }
 0xb51   :  { %849 = vperm.xlu2 %1302, %v1694_v33   ;;  %935 = vmatpush.msra.mxu2 %v1732_v18 }
 0xb53   :  { %936 = vmatpush.msra.mxu2 %v1741_v53 }
 0xb74   :  { %v700_v10 = vpop.permute.xlu2 %699 }
 0xb75   :  { %vm702_vm7 = vcmp.ge.f32.partialorder %v700_v10, %v1694_v33 }
 0xb76   :  { %v1180_v34 = vsel %vm702_vm7, 1.0, %v1521_v35 }
 0xb77   :  { %v706_v55 = vmul.f32 %v1180_v34, %v700_v10 }
 0xb7d   :  { %v730_v11 = vpop.permute.xlu2 %729 }
 0xb7e   :  { %vm732_vm8 = vcmp.ge.f32.partialorder %v730_v11, %v1694_v33 }
 0xb7f   :  { %v1183_v50 = vsel %vm732_vm8, 1.0, %v1521_v35 }
 0xb80   :  { %v736_v62 = vmul.f32 %v1183_v50, %v730_v11 }
 0xb87   :  { %v750_v12 = vpop.permute.xlu2 %749 }
 0xb88   :  { %vm752_vm9 = vcmp.ge.f32.partialorder %v750_v12, %v1694_v33 }
 0xb89   :  { %v1185_v51 = vsel %vm752_vm9, 1.0, %v1521_v35 }
 0xb8a   :  { %v756_v63 = vmul.f32 %v1185_v51, %v750_v12 }
 0xb8b   :  { %v710_v13 = vpop.permute.xlu1 %709  ;;  %v720_v16 = vpop.permute.xlu0 %719 }
 0xb8c   :  { %vm722_vm10 = vcmp.ge.f32.partialorder %v720_v16, %v1694_v33  ;;  %vm712_vm11 = vcmp.ge.f32.partialorder %v710_v13, %v1694_v33 }
 0xb8d   :  { %v1182_v54 = vsel %vm722_vm10, 1.0, %v1521_v35  ;;  %v1181_v57 = vsel %vm712_vm11, 1.0, %v1521_v35 }
 0xb8e   :  { %v726_v2 = vmul.f32 %v1182_v54, %v720_v16  ;;  %v716_v4 = vmul.f32 %v1181_v57, %v710_v13  ;;  %v755_v8 = vadd.f32 %v1185_v51, %v1181_v57 }
 0xb90   :  { %v780_v14 = vpop.permute.xlu2 %779  ;;  %v757_v61 = vadd.f32 %v756_v63, %v716_v4 }
 0xb91   :  { %vm782_vm1 = vcmp.ge.f32.partialorder %v780_v14, %v1694_v33 }
 0xb92   :  { %v1188_v28 = vsel %vm782_vm1, 1.0, %v1521_v35 }
 0xb93   :  { %v786_v7 = vmul.f32 %v1188_v28, %v780_v14 }
 0xb94   :  { %v770_v20 = vpop.permute.xlu0 %769 }
 0xb95   :  { %v740_v15 = vpop.permute.xlu1 %739  ;;  %vm772_vm14 = vcmp.ge.f32.partialorder %v770_v20, %v1694_v33 }
 0xb96   :  { %vm742_vm12 = vcmp.ge.f32.partialorder %v740_v15, %v1694_v33  ;;  %v1187_v3 = vsel %vm772_vm14, 1.0, %v1521_v35 }
 0xb97   :  { %v1184_v1 = vsel %vm742_vm12, 1.0, %v1521_v35  ;;  %v775_v27 = vadd.f32 %v1187_v3, %v1183_v50  ;;  %v776_v29 = vmul.f32 %v1187_v3, %v770_v20 }
 0xb98   :  { %v745_v23 = vadd.f32 %v1184_v1, %v1180_v34  ;;  %v746_v31 = vmul.f32 %v1184_v1, %v740_v15 }
 0xb99   :  { %v800_v19 = vpop.permute.xlu2 %799  ;;  %v777_v45 = vadd.f32 %v776_v29, %v736_v62 }
 0xb9a   :  { %vm802_vm3 = vcmp.ge.f32.partialorder %v800_v19, %v1694_v33  ;;  %v785_v40 = vadd.f32 %v1188_v28, %v745_v23  ;;  %v747_v43 = vadd.f32 %v746_v31, %v706_v55 }
 0xb9b   :  { %v1190_v36 = vsel %vm802_vm3, 1.0, %v1521_v35 }
 0xb9c   :  { %v806_v44 = vmul.f32 %v1190_v36, %v800_v19 }
 0xb9e   :  { %v760_v17 = vpop.permute.xlu1 %759  ;;  %v820_v58 = vpop.permute.xlu0 %819 }
 0xb9f   :  { %vm762_vm13 = vcmp.ge.f32.partialorder %v760_v17, %v1694_v33  ;;  %vm822_vm4 = vcmp.ge.f32.partialorder %v820_v58, %v1694_v33 }
 0xba0   :  { %v1186_v52 = vsel %vm762_vm13, 1.0, %v1521_v35  ;;  %v1192_v37 = vsel %vm822_vm4, 1.0, %v1521_v35 }
 0xba1   :  { %v766_v24 = vmul.f32 %v1186_v52, %v760_v17  ;;  %v765_v32 = vadd.f32 %v1186_v52, %v1182_v54  ;;  %v825_v9 = vadd.f32 %v1192_v37, %v785_v40  ;;  %v826_v12 = vmul.f32 %v1192_v37, %v820_v58 }
 0xba2   :  { %v1727_v22 = vpop.permute.xlu2 %829 }
 0xba3   :  { %vm832_vm5 = vcmp.ge.f32.partialorder %v1727_v22, %v1694_v33  ;;  %v767_v42 = vadd.f32 %v766_v24, %v726_v2  ;;  %v805_v11 = vadd.f32 %v1190_v36, %v765_v32 }
 0xba4   :  { %v1193_v30 = vsel %vm832_vm5, 1.0, %v1521_v35 }
 0xba5   :  { %v836_v13 = vmul.f32 %v1193_v30, %v1727_v22  ;;  %v807_v14 = vadd.f32 %v806_v44, %v767_v42 }
 0xba7   :  { %v790_v21 = vpop.permute.xlu1 %789 }
 0xba8   :  { %vm792_vm15 = vcmp.ge.f32.partialorder %v790_v21, %v1694_v33 }
 0xba9   :  { %v1189_v5 = vsel %vm792_vm15, 1.0, %v1521_v35 }
 0xbaa   :  { %v796_v38 = vmul.f32 %v1189_v5, %v790_v21  ;;  %v795_v39 = vadd.f32 %v1189_v5, %v755_v8  ;;  %v787_v21 = vadd.f32 %v786_v7, %v747_v43  ;;  %v1775_v5 = vpack.i.bf16 %v1741_v53, %v1732_v18  ;;  %v1779_v8 = vld [vmem:[#allocation8 + $0x2] ss:$0 sm:$0xff] }
 0xbab   :  { %v850_v25 = vpop.permute.xlu2 %849 }
 0xbac   :  { %vm852_vm6 = vcmp.ge.f32.partialorder %v850_v25, %v1694_v33  ;;  %v797_v46 = vadd.f32 %v796_v38, %v757_v61  ;;  %v835_v49 = vadd.f32 %v1193_v30, %v795_v39  ;;  %v827_v57 = vadd.f32 %v826_v12, %v787_v21  ;;  %1304 = vrot.lane.b32.xlu2 %v1775_v5, %s1502_s2 }
 0xbad   :  { %v1195_v47 = vsel %vm852_vm6, 1.0, %v1521_v35 }
 0xbae   :  { %v856_v16 = vmul.f32 %v1195_v47, %v850_v25  ;;  %v837_v34 = vadd.f32 %v836_v13, %v797_v46  ;;  %v858_v50 = vadd.f32 %v835_v49, %v825_v9  ;;  %v470_v25 = vsub.f32 0.0, %v1669_v60 }
 0xbb0   :  { %v810_v56 = vpop.permute.xlu1 %809  ;;  %v861_v1 = vadd.f32 %v837_v34, %v827_v57 }
 0xbb1   :  { %vm812_vm2 = vcmp.ge.f32.partialorder %v810_v56, %v1694_v33 }
 0xbb2   :  { %v1191_v26 = vsel %vm812_vm2, 1.0, %v1521_v35 }
 0xbb3   :  { %v816_v59 = vmul.f32 %v1191_v26, %v810_v56  ;;  %v815_v41 = vadd.f32 %v1191_v26, %v775_v27 }
 0xbb5   :  { %v817_v10 = vadd.f32 %v816_v59, %v777_v45  ;;  %v855_v17 = vadd.f32 %v1195_v47, %v815_v41 }
 0xbb7   :  { %v857_v51 = vadd.f32 %v856_v16, %v817_v10 }
 0xbb9   :  { %v840_v0 = vpop.permute.xlu1 %839 }
 0xbba   :  { %vm842_vm7 = vcmp.ge.f32.partialorder %v840_v0, %v1694_v33 }
 0xbbb   :  { %v1194_v15 = vsel %vm842_vm7, 1.0, %v1521_v35 }
 0xbbc   :  { %v845_v20 = vadd.f32 %v1194_v15, %v805_v11  ;;  %v846_v19 = vmul.f32 %v1194_v15, %v840_v0 }
 0xbbe   :  { %v847_v54 = vadd.f32 %v846_v19, %v807_v14  ;;  %v859_v55 = vadd.f32 %v855_v17, %v845_v20 }
 0xbc0   :  { %v862_v62 = vadd.f32 %v857_v51, %v847_v54  ;;  %v860_v63 = vadd.f32 %v859_v55, %v858_v50 }
 0xbc2   :  { %v864_v58 = vmul.f32 %v860_v63, %v1694_v33  ;;  %v863_v22 = vadd.f32 %v862_v62, %v861_v1 }
 0xbc4   :  { %v865_v52 = vadd.f32 1.0, %v864_v58 }
 0xbc6   :  { %vm866_vm8 = vcmp.gt.f32.partialorder %v865_v52, %v863_v22 }
 0xbc7   :  { %v1196_v56 = vsel %vm866_vm8, 1.0, %v1521_v35  ;;  %v471_v35 = vadd.f32 1e-10, %v1669_v60 }
 0xbc8   :  { %v869_v2 = vsel %vm77_vm0, %v1196_v56, 0.0  ;;  %v872_v3 = vmul.f32 %v1196_v56, %v1694_v33 }
 0xbc9   :  { %870 = vadd.xlane.f32.xlu1 %v869_v2  ;;  %1358 = vlog2.f32 %v471_v35 }
 0xbca   :  { %v873_v4 = vsel %vm77_vm0, %v872_v3, 0.0 }
 0xbcb   :  { %874 = vadd.xlane.f32.xlu0 %v873_v4 }
 0xbcf   :  { %v1359_v23 = vpop.eup %1358 }
 0xbd0   :  { %v473_v24 = vmul.f32 0.6931472, %v1359_v23 }
 0xbd2   :  { %v474_v26 = vmul.f32 %v473_v24, %v470_v25 }
 0xbd4   :  { %v475_v28 = vsel %vm77_vm0, %v474_v26, 0.0 }
 0xbdf   :  { %1314 = vrot.lane.b32.xlu0 %v1775_v5, %s1504_s6 }
 0xbe2   :  { %1003 = vrot.lane.b32.xlu1 %v1779_v8, %s1503_s5 }
 0xc06   :  { %v1305_v58 = vpop.permute.xlu2 %1304 }
 0xc07   :  { %v1307_v22 = vunpack.i.h.bf16 %v1305_v58  ;;  %v1306_v52 = vunpack.i.l.bf16 %v1305_v58 }
 0xc09   :  { %476 = vadd.xlane.f32.xlu0 %v475_v28  ;;  %979 = vmatpush.msra.mxu3 %v1306_v52 }
 0xc0b   :  { %980 = vmatpush.msra.mxu3 %v1307_v22 }
 0xc3c   :  { %v871_v18 = vpop.xlane.xlu1 %870 }
 0xc3d   :  { %1360 = vrcp.f32 %v871_v18  ;;  %v888_v31 = vand.u32 2147483648, %v871_v18  ;;  %v886_v37 = vand.u32 2147483647, %v871_v18  ;;  %vm882_vm10 = vweird.f32 %v871_v18 }
 0xc3e   :  { %v875_v38 = vpop.xlane.xlu0 %874 }
 0xc3f   :  { %v889_v39 = vor.u32 1.1754944e-38, %v888_v31  ;;  %v1197_v59 = vadd.f32 -1.0, %v875_v38  ;;  %vm887_vm12 = vcmp.eq.f32.partialorder %v886_v37, 8.507059e+37 }
 0xc43   :  { %v1361_v53 = vpop.eup %1360 }
 0xc44   :  { %v878_v27 = vmul.f32 %v1361_v53, %v871_v18  ;;  %vm883_vm9 = vweird.f32 %v1361_v53 }
 0xc45   :  { %vm884_vm11 = vmor %vm882_vm10, %vm883_vm9 }
 0xc46   :  { %v879_v29 = vsub.f32 1.0, %v878_v27 }
 0xc48   :  { %v880_v36 = vmul.f32 %v1361_v53, %v879_v29 }
 0xc4a   :  { %v881_v32 = vadd.f32 %v1361_v53, %v880_v36 }
 0xc4c   :  { %v885_v60 = vsel %vm884_vm11, %v1361_v53, %v881_v32 }
 0xc4d   :  { %v890_v61 = vsel %vm887_vm12, %v889_v39, %v885_v60 }
 0xc4e   :  { %v891_v7 = vmul.f32 %v1197_v59, %v890_v61 }
 0xc50   :  { %v892_v40 = vsub.f32 %v1694_v33, %v891_v7 }
 0xc51   :  { %v1315_v42 = vpop.permute.xlu0 %1314 }
 0xc52   :  { %v893_v45 = vmax.f32 %v892_v40, 0.0  ;;  %v1317_v43 = vunpack.i.h.bf16 %v1315_v42  ;;  %v1316_v30 = vunpack.i.l.bf16 %v1315_v42 }
 0xc54   :  { %v911_v41 = vmul.f32 %v893_v45, %v1564_v6  ;;  %v895_v44 = vadd.f32 1e-10, %v893_v45  ;;  %1067 = vmatpush.msrb.mxu1 %v1316_v30  ;;  %v894_v46 = vsub.f32 0.0, %v893_v45  ;;  %v1004_v15 = vpop.permute.xlu1 %1003 }
 0xc56   :  { %1198 = vmatmul.msk.f32.vlgmr.msra.gmra.mxu2 %vm77_vm0, %v911_v41  ;;  %1362 = vlog2.f32 %v895_v44  ;;  %1068 = vmatpush.msrb.mxu1 %v1317_v43 }
 0xc5c   :  { %v1363_v9 = vpop.eup %1362 }
 0xc5d   :  { %v897_v47 = vmul.f32 0.6931472, %v1363_v9 }
 0xc5f   :  { %v898_v0 = vmul.f32 %v897_v47, %v894_v46 }
 0xc61   :  { %v899_v49 = vsel %vm77_vm0, %v898_v0, 0.0 }
 0xc62   :  { %900 = vadd.xlane.f32.xlu1 %v899_v49  ;;  %v1088_v49 = vld [vmem:[#allocation6 + $0x48] sm:$0xff] }
 0xc63   :  { %1110 = vmatpush.msrb.mxu2 %v1088_v49 }
 0xc7c   :  { %v477_v33 = vpop.xlane.xlu0 %476 }
 0xc7d   :  { %v478_v10 = vrot.slane %v477_v33, 4 }
 0xc7f   :  { %v479_v11 = vadd.f32 %v478_v10, %v477_v33 }
 0xc81   :  { %v480_v12 = vrot.slane %v479_v11, 2 }
 0xc83   :  { %v481_v13 = vadd.f32 %v480_v12, %v479_v11 }
 0xc85   :  { %v482_v14 = vrot.slane %v481_v13, 1 }
 0xc87   :  { %v483_v6 = vadd.f32 %v482_v14, %v481_v13  ;;  %v661_v13 = vmax.f32 %v1690_v48, 0.0 }
 0xc89   :  { %1203 = vpush %v483_v6 }
 0xcba   :  { %s1204_s8 = spop %1203 }
 0xcbb   :  { %s485_s9 = smul.f32 0.0078125, %s1204_s8 }
 0xcd5   :  { %v901_v16 = vpop.xlane.xlu1 %900 }
 0xcd6   :  { %v902_v17 = vrot.slane %v901_v16, 4 }
 0xcd8   :  { %v903_v20 = vadd.f32 %v902_v17, %v901_v16 }
 0xcd9   :  { %v938_v19 = vpop.f32.mrf.mxu2 }
 0xcda   :  { %v904_v21 = vrot.slane %v903_v20, 2  ;;  %v939_v34 = vadd.f32 %v1779_v8, %v938_v19 }
 0xcdc   :  { %v905_v50 = vadd.f32 %v904_v21, %v903_v20  ;;  %v941_v51 = vsub.f32 0.0, %v939_v34 }
 0xcde   :  { %v942_v54 = vmul.f32 1.442695, %v941_v51  ;;  %v906_v55 = vrot.slane %v905_v50, 1 }
 0xce0   :  { %1364 = vpow2.f32 %v942_v54  ;;  %v907_v57 = vadd.f32 %v906_v55, %v905_v50 }
 0xce2   :  { %1205 = vpush %v907_v57 }
 0xce6   :  { %v1365_v62 = vpop.eup %1364 }
 0xce7   :  { %v944_v63 = vadd.f32 1.0, %v1365_v62 }
 0xce9   :  { %1366 = vrcp.f32 %v944_v63 }
 0xcef   :  { %v1367_v1 = vpop.eup %1366 }
 0xcf0   :  { %947 = vrot.lane.b32.xlu2 %v1367_v1, %s1501_s0 }
 0xcf8   :  { %959 = vrot.lane.b32.xlu2 %v1779_v8, %s1502_s2 }
 0xd13   :  { %s1206_s10 = spop %1205 }
 0xd14   :  { %s909_s11 = smul.f32 0.0078125, %s1206_s10 }
 0xd16   :  { %s910_s12 = sadd.f32 %s909_s11, %s485_s9 }
 0xd18   :  { %1118 = sst [smem:[#allocation10]] %s910_s12 }
 0xd19   :  { %1138 = dma.smem_to_hbm %s1523_s16, 16, %s1136_s15, [#allocation5]  }
 0xd4a   :  { %v948_v56 = vpop.permute.xlu2 %947 }
 0xd4b   :  { %v950_v2 = vmul.f32 %v948_v56, %v939_v34 }
 0xd4d   :  { %1199 = vmatmul.msk.f32.vlgmr.msra.gmra.mxu3 %vm77_vm0, %v950_v2 }
 0xd52   :  { %v960_v3 = vpop.permute.xlu2 %959 }
 0xdd0   :  { %v982_v4 = vpop.f32.mrf.mxu3 }
 0xdd1   :  { %v983_v35 = vadd.f32 %v982_v4, %v960_v3 }
 0xdd3   :  { %v985_v23 = vsub.f32 0.0, %v983_v35 }
 0xdd5   :  { %v986_v24 = vmul.f32 1.442695, %v985_v23 }
 0xdd7   :  { %1368 = vpow2.f32 %v986_v24 }
 0xddd   :  { %v1369_v25 = vpop.eup %1368 }
 0xdde   :  { %v988_v26 = vadd.f32 1.0, %v1369_v25 }
 0xde0   :  { %1370 = vrcp.f32 %v988_v26 }
 0xde6   :  { %v1371_v28 = vpop.eup %1370 }
 0xde7   :  { %991 = vrot.lane.b32.xlu2 %v1371_v28, %s1501_s0 }
 0xdef   :  { %1309 = vrot.lane.b32.xlu2 %v1775_v5, %s1503_s5 }
 0xe41   :  { %v992_v18 = vpop.permute.xlu2 %991 }
 0xe42   :  { %v994_v53 = vmul.f32 %v992_v18, %v983_v35 }
 0xe44   :  { %v995_v27 = vadd.f32 %v994_v53, %v950_v2 }
 0xe46   :  { %v996_v37 = vmul.f32 0.70710677, %v995_v27 }
 0xe49   :  { %v1310_v29 = vpop.permute.xlu2 %1309 }
 0xe4a   :  { %v1311_v31 = vunpack.i.l.bf16 %v1310_v29  ;;  %v1312_v36 = vunpack.i.h.bf16 %v1310_v29 }
 0xe4c   :  { %1023 = vmatpush.msrb.mxu0 %v1311_v31 }
 0xe4e   :  { %1024 = vmatpush.msrb.mxu0 %v1312_v36 }
 0xe4f   :  { %1200 = vmatmul.msk.f32.vlgmr.msrb.gmra.mxu0 %vm77_vm0, %v996_v37 }
 0xecc   :  { %v1026_v38 = vpop.f32.mrf.mxu0 }
 0xecd   :  { %v1027_v32 = vadd.f32 %v1026_v38, %v1004_v15  ;;  %v1323_v15 = vld [vmem:[#allocation8 + $0x4] ss:$0 sm:$0xff] }
 0xecf   :  { %v1029_v39 = vsub.f32 0.0, %v1027_v32 }
 0xed1   :  { %v1030_v59 = vmul.f32 1.442695, %v1029_v39 }
 0xed3   :  { %1372 = vpow2.f32 %v1030_v59 }
 0xed9   :  { %v1373_v60 = vpop.eup %1372 }
 0xeda   :  { %v1032_v61 = vadd.f32 1.0, %v1373_v60 }
 0xedc   :  { %1374 = vrcp.f32 %v1032_v61 }
 0xee2   :  { %v1375_v5 = vpop.eup %1374 }
 0xee3   :  { %1035 = vrot.lane.b32.xlu2 %v1375_v5, %s1501_s0 }
 0xeeb   :  { %1047 = vrot.lane.b32.xlu2 %v1779_v8, %s1504_s6  ;;  %v1087_v8 = vld [vmem:[#allocation6 + $0x20] sm:$0xff] }
 0xeec   :  { %1111 = vmatpush.msrb.mxu2 %v1087_v8 }
 0xf3d   :  { %v1036_v7 = vpop.permute.xlu2 %1035 }
 0xf3e   :  { %v1038_v40 = vmul.f32 %v1036_v7, %v1027_v32 }
 0xf40   :  { %v1039_v42 = vadd.f32 %v1038_v40, %v996_v37 }
 0xf42   :  { %v1040_v45 = vmul.f32 0.70710677, %v1039_v42 }
 0xf44   :  { %1201 = vmatmul.msk.f32.vlgmr.msrb.gmra.mxu1 %vm77_vm0, %v1040_v45 }
 0xf45   :  { %v1048_v43 = vpop.permute.xlu2 %1047 }
 0xfc1   :  { %v1070_v30 = vpop.f32.mrf.mxu1 }
 0xfc2   :  { %v1071_v41 = vadd.f32 %v1070_v30, %v1048_v43 }
 0xfc4   :  { %v1073_v44 = vsub.f32 0.0, %v1071_v41 }
 0xfc6   :  { %v1074_v9 = vmul.f32 1.442695, %v1073_v44 }
 0xfc8   :  { %1376 = vpow2.f32 %v1074_v9 }
 0xfce   :  { %v1377_v46 = vpop.eup %1376 }
 0xfcf   :  { %v1076_v47 = vadd.f32 1.0, %v1377_v46 }
 0xfd1   :  { %1378 = vrcp.f32 %v1076_v47 }
 0xfd7   :  { %v1379_v0 = vpop.eup %1378 }
 0xfd8   :  { %1079 = vrot.lane.b32.xlu2 %v1379_v0, %s1501_s0 }
0x1032   :  { %v1080_v33 = vpop.permute.xlu2 %1079 }
0x1033   :  { %v1082_v10 = vmul.f32 %v1080_v33, %v1071_v41 }
0x1035   :  { %v1083_v11 = vadd.f32 %v1082_v10, %v1040_v45 }
0x1037   :  { %v1084_v12 = vmul.f32 0.70710677, %v1083_v11 }
0x1039   :  { %v1085_v14 = vmax.f32 %v1084_v12, 0.0 }
0x103b   :  { %v1086_v6 = vadd.f32 %v1085_v14, %v661_v13 }
0x103d   :  { %1202 = vmatmul.msk.f32.vlgmr.msrb.gmra.mxu2 %vm77_vm0, %v1086_v6 }
0x10c0   :  { %v1113_v16 = vpop.f32.mrf.mxu2 }
0x10c1   :  { %v1114_v48 = vadd.f32 %v1323_v15, %v1113_v16 }
0x10c3   :  { %1116 = vst [vmem:[#allocation9] sm:$0xff] %v1114_v48 }
0x10c4   :  { %1129 = dma.vmem_to_hbm [thread:$0]  %s1125_s18, 128, %s1127_s21, [#allocation4]  }
0x10c5   :  { %1492 = dma.done.wait [#allocation4], 128  }
0x10c6   :  { %1493 = vsyncadd [#allocation4], 4294967168 }
0x10c7   :  { %1494 = dma.done.wait [#allocation5], 16  }
0x10c8   :  { %1495 = vsyncadd [#allocation5], 4294967280 }
0x10c9   :  { %1147 = sfence }
0x10ca   :  { %1148 = vsyncpa [#allocation3], 1 }
0x10cb   :  { %1149 = vsyncpa [#allocation7], 1 }
0x10cc   :  { %1150 = vsyncpa [#allocation4], 1 }
0x10cd   :  { %1151 = vsyncpa [#allocation5], 1 }

</bundles_post_ra>
